<compile_context>
chip_gen: v7x
topology: tpu7x:2x2x1
jax: 0.10.0
libtpu: 0.0.40
codegen_flags: <defaults>
</compile_context>

<pallas_src>
import jax
import jax.numpy as jnp
from jax import lax
from jax.experimental import pallas as pl
from jax.experimental.pallas import tpu as pltpu

EPS = 1e-5            # nn.LayerNorm default eps
LEAKY_SLOPE = 0.01    # nn.LeakyReLU default negative_slope


def _layernorm(x, eps=EPS):
    """LayerNorm over the last dim, no affine (two-pass variance)."""
    mu = jnp.mean(x, axis=-1, keepdims=True)
    var = jnp.mean((x - mu) ** 2, axis=-1, keepdims=True)
    return (x - mu) * lax.rsqrt(var + eps)


def _layernorm_1pass(x, eps=EPS):
    """LayerNorm with var = E[x^2] - E[x]^2 so the two reductions are independent
    (shorter per-timestep latency chain inside the recurrence)."""
    mu = jnp.mean(x, axis=-1, keepdims=True)
    ms = jnp.mean(x * x, axis=-1, keepdims=True)
    var = jnp.maximum(ms - mu * mu, 0.0)
    return (x - mu) * lax.rsqrt(var + eps)


def _row_tile(n, target=512):
    """Row-tile size: full array if small, else a multiple-of-8 tile <= target."""
    if n <= target:
        return n
    return max(8, target - target % 8)


def _choose_time_block(B, H, T, budget_bytes=8 * 1024 * 1024, cap=128):
    """Pick TT (multiple of 8) so the double-buffered pipelined blocks of kernel B
    (f32 (B,TT,2H) input + bf16 (B,TT,H) output) stay under `budget_bytes`."""
    per_t = 2 * B * (2 * H) * 4 + 2 * B * H * 2
    tt = (budget_bytes // max(per_t, 1)) // 8 * 8
    tt = max(8, min(cap, tt))
    t_pad8 = -(-T // 8) * 8
    return min(tt, t_pad8)


# ---------------- kernel A: input projection + affine LayerNorm ----------------
def _wproj_kernel(x_ref, w_ref, g_ref, b_ref, o_ref):
    # x_ref, w_ref are bf16; accumulate and normalize in f32.
    w = jnp.dot(x_ref[...], w_ref[...], preferred_element_type=jnp.float32)
    o_ref[...] = _layernorm(w) * g_ref[...] + b_ref[...]


def input_projection(x2d_bf, w_w_bf, gamma, beta):
    n, f = x2d_bf.shape
    two_h = w_w_bf.shape[1]
    tm = _row_tile(n)
    return pl.pallas_call(
        _wproj_kernel,
        out_shape=jax.ShapeDtypeStruct((n, two_h), jnp.float32),
        grid=(pl.cdiv(n, tm),),
        in_specs=[
            pl.BlockSpec((tm, f), lambda i: (i, 0)),
            pl.BlockSpec((f, two_h), lambda i: (0, 0)),
            pl.BlockSpec((1, two_h), lambda i: (0, 0)),
            pl.BlockSpec((1, two_h), lambda i: (0, 0)),
        ],
        out_specs=pl.BlockSpec((tm, two_h), lambda i: (i, 0)),
        compiler_params=pltpu.CompilerParams(dimension_semantics=("parallel",)),
    )(x2d_bf, w_w_bf, gamma, beta)


# ------------------- kernel B: SLiGRU recurrence (hidden states only) ----------
def _sligru_kernel(w_ref, u_ref, h_out_ref, h_ref):
    # w_ref     : (B, TT, 2H) f32   LayerNormed input pre-activations for this time block
    # u_ref     : (H, 2H)    bf16   recurrent weight (grid-invariant)
    # h_out_ref : (B, TT, H) bf16   hidden states for this time block (lane-dense last dim)
    # h_ref     : (B, H)     f32    VMEM scratch carrying the hidden state across grid steps
    t = pl.program_id(0)
    hidden = h_ref.shape[1]
    tt_block = w_ref.shape[1]

    @pl.when(t == 0)
    def _():
        h_ref[...] = jnp.zeros_like(h_ref)

    u = u_ref[...]  # loaded once per time block

    def body(tt, ht):
        wt = w_ref[:, pl.ds(tt, 1), :][:, 0, :]                             # (B, 2H)
        uh = jnp.dot(ht.astype(jnp.bfloat16), u,
                     preferred_element_type=jnp.float32)                    # (B, 2H)
        gates = wt + _layernorm_1pass(uh)
        at = gates[:, :hidden]
        zt = jax.nn.sigmoid(gates[:, hidden:])
        hcand = jnp.where(at > 0, at, LEAKY_SLOPE * at)                     # leaky_relu (eval dropout = id)
        ht_new = zt * ht + (1.0 - zt) * hcand
        h_out_ref[:, pl.ds(tt, 1), :] = ht_new.astype(h_out_ref.dtype)[:, None, :]
        return ht_new

    # Bounded unroll keeps LLO scheduling visibility without blowing vreg pressure
    # at production hidden sizes.
    h_ref[...] = lax.fori_loop(0, tt_block, body, h_ref[...],
                               unroll=min(8, tt_block))


# -------------------- kernel C: hoisted decoder Linear (h @ Wd + bd) -----------
def _decoder_kernel(h_ref, wd_ref, bd_ref, o_ref):
    # h_ref, wd_ref are bf16; accumulate in f32 and add f32 bias.
    o_ref[...] = (
        jnp.dot(h_ref[...], wd_ref[...], preferred_element_type=jnp.float32)
        + bd_ref[...]
    )


def decoder_projection(h2d_bf, wd_bf, bd):
    n, hdim = h2d_bf.shape
    o = wd_bf.shape[1]
    tm = _row_tile(n)
    tn = o if o <= 1024 else 1024  # tile large vocab outputs; small O = full-dim block
    return pl.pallas_call(
        _decoder_kernel,
        out_shape=jax.ShapeDtypeStruct((n, o), jnp.float32),
        grid=(pl.cdiv(n, tm), pl.cdiv(o, tn)),
        in_specs=[
            pl.BlockSpec((tm, hdim), lambda i, j: (i, 0)),
            pl.BlockSpec((hdim, tn), lambda i, j: (0, j)),
            pl.BlockSpec((1, tn), lambda i, j: (0, j)),
        ],
        out_specs=pl.BlockSpec((tm, tn), lambda i, j: (i, j)),
        compiler_params=pltpu.CompilerParams(
            dimension_semantics=("parallel", "parallel")),
    )(h2d_bf, wd_bf, bd)


@jax.jit
def sligru_rnnt_forward(x, params):
    """x: (B, T, input_size) float32 -> (B, T, out_size) float32."""
    B, T, F = x.shape
    w_w, gamma, beta, u, wd, bd = (
        params["w_w"], params["gamma"], params["beta"],
        params["u"], params["wd"], params["bd"],
    )
    H = u.shape[0]
    O = wd.shape[1]

    # VMEM-budget-derived time block; pad T up to a multiple of TT (no TT=T fallback).
    TT = _choose_time_block(B, H, T)
    T_pad = -(-T // TT) * TT
    if T_pad != T:
        x = jnp.pad(x, ((0, 0), (0, T_pad - T), (0, 0)))

    # bf16 operands for every matmul (f32 accumulation); weights cast once here.
    x_bf = x.astype(jnp.bfloat16)
    w_w_bf = w_w.astype(jnp.bfloat16)
    u_bf = u.astype(jnp.bfloat16)
    wd_bf = wd.astype(jnp.bfloat16)

    # Feed-forward part of SLiGRU (all time steps at once) + affine LayerNorm.
    w2d = input_projection(x_bf.reshape(B * T_pad, F), w_w_bf, gamma, beta)   # (B*T_pad, 2H) f32
    w_btf = w2d.reshape(B, T_pad, 2 * H)                                      # free reshape, no transpose

    # Recurrence: TT timesteps per grid step, hidden state carried in VMEM scratch.
    h_bth = pl.pallas_call(
        _sligru_kernel,
        out_shape=jax.ShapeDtypeStruct((B, T_pad, H), jnp.bfloat16),
        grid=(T_pad // TT,),
        in_specs=[
            pl.BlockSpec((B, TT, 2 * H), lambda t: (0, t, 0)),
            pl.BlockSpec((H, 2 * H), lambda t: (0, 0)),
        ],
        out_specs=pl.BlockSpec((B, TT, H), lambda t: (0, t, 0)),
        scratch_shapes=[pltpu.VMEM((B, H), jnp.float32)],
        compiler_params=pltpu.CompilerParams(dimension_semantics=("arbitrary",)),
    )(w_btf, u_bf)

    # Decoder Linear hoisted out of the recurrent loop: one big batched matmul.
    out2d = decoder_projection(h_bth.reshape(B * T_pad, H), wd_bf, bd)        # (B*T_pad, O) f32
    out = out2d.reshape(B, T_pad, O)
    return out[:, :T, :] if T_pad != T else out


# ------------------------------ pure-JAX reference ------------------------------
def reference_forward(x, params):
    """Matches the kernels' bf16-matmul / f32-accumulate precision choices exactly;
    remove the .astype(bfloat16) casts to recover pure-f32 module semantics."""
    H = params["u"].shape[0]
    B = x.shape[0]
    xb = x.astype(jnp.bfloat16)
    wwb = params["w_w"].astype(jnp.bfloat16)
    ub = params["u"].astype(jnp.bfloat16)
    wdb = params["wd"].astype(jnp.bfloat16)

    w = _layernorm(jnp.einsum("btf,fg->btg", xb, wwb,
                              preferred_element_type=jnp.float32))
    w = w * params["gamma"] + params["beta"]                                 # (B, T, 2H)

    def step(ht, wt):
        uh = jnp.dot(ht.astype(jnp.bfloat16), ub,
                     preferred_element_type=jnp.float32)
        gates = wt + _layernorm_1pass(uh)
        at, zpre = gates[:, :H], gates[:, H:]
        zt = jax.nn.sigmoid(zpre)
        hcand = jnp.where(at > 0, at, LEAKY_SLOPE * at)
        ht = zt * ht + (1.0 - zt) * hcand
        return ht, ht

    h0 = jnp.zeros((B, H), jnp.float32)
    _, hs = lax.scan(step, h0, w.transpose(1, 0, 2))
    h = hs.transpose(1, 0, 2).astype(jnp.bfloat16)                           # (B, T, H)
    return jnp.einsum("bth,ho->bto", h, wdb,
                      preferred_element_type=jnp.float32) + params["bd"]


def _make_params(key, F, H, O):
    k1, k2, k3, k4 = jax.random.split(key, 4)
    return {
        # SLiGRU_Layer.w : Linear(F, 2H, bias=False)  -> stored as (F, 2H)
        "w_w": jax.random.normal(k1, (F, 2 * H), jnp.float32) * (1.0 / jnp.sqrt(F)),
        # SLiGRU_Layer.norm : LayerNorm(2H) affine params
        "gamma": jnp.ones((1, 2 * H), jnp.float32),
        "beta": jnp.zeros((1, 2 * H), jnp.float32),
        # SLiGRU_Layer.u : Linear(H, 2H, bias=False)  -> stored as (H, 2H)
        "u": jax.random.normal(k2, (H, 2 * H), jnp.float32) * (1.0 / jnp.sqrt(H)),
        # decoder : Linear(H, O)  -> stored as (H, O) + bias (1, O)
        "wd": jax.random.normal(k3, (H, O), jnp.float32) * (1.0 / jnp.sqrt(H)),
        "bd": jax.random.normal(k4, (1, O), jnp.float32) * 0.1,
    }


if __name__ == "__main__":
    # Small shapes consistent with the module: (batch, time, input_size)
    B, F, H, O = 2, 16, 32, 24
    key = jax.random.PRNGKey(0)
    kp, kx1, kx2 = jax.random.split(key, 3)
    params = _make_params(kp, F, H, O)

    # Case 1: T already a multiple of the time block.
    T = 8
    x = jax.random.normal(kx1, (B, T, F), jnp.float32)
    out = jax.block_until_ready(sligru_rnnt_forward(x, params))
    ref = reference_forward(x, params)
    assert out.shape == (B, T, O), out.shape
    assert jnp.allclose(out, ref, atol=2e-3, rtol=2e-3), float(jnp.max(jnp.abs(out - ref)))

    # Case 2: T not a multiple of 8 -> exercises the time-padding path.
    T2 = 12
    x2 = jax.random.normal(kx2, (B, T2, F), jnp.float32)
    out2 = jax.block_until_ready(sligru_rnnt_forward(x2, params))
    ref2 = reference_forward(x2, params)
    assert out2.shape == (B, T2, O), out2.shape
    assert jnp.allclose(out2, ref2, atol=2e-3, rtol=2e-3), float(jnp.max(jnp.abs(out2 - ref2)))

    print("KERNEL_OK")
</pallas_src>

<mosaic_0001>
module attributes {stable_mosaic.version = 11 : i64} {
  func.func @_wproj_kernel(%arg0: i32, %arg1: memref<16x16xbf16, #tpu.memory_space<vmem>>, %arg2: memref<16x64xbf16, #tpu.memory_space<vmem>>, %arg3: memref<1x64xf32, #tpu.memory_space<vmem>>, %arg4: memref<1x64xf32, #tpu.memory_space<vmem>>, %arg5: memref<16x64xf32, #tpu.memory_space<vmem>>) attributes {dimension_semantics = [#tpu.dimension_semantics<parallel>], iteration_bounds = array<i64: 1>, scalar_prefetch = 0 : i64, scratch_operands = 0 : i64, tpu.core_type = #tpu.core_type<tc>, window_params = [{transform_indices = @transform_0, window_bounds = array<i64: 16, 16>}, {pipeline_mode = #tpu.pipeline_mode<synchronous>, transform_indices = @transform_1, window_bounds = array<i64: 16, 64>}, {pipeline_mode = #tpu.pipeline_mode<synchronous>, transform_indices = @transform_2, window_bounds = array<i64: 1, 64>}, {pipeline_mode = #tpu.pipeline_mode<synchronous>, transform_indices = @transform_3, window_bounds = array<i64: 1, 64>}, {transform_indices = @transform_4, window_bounds = array<i64: 16, 64>}]} {
    %c0 = arith.constant 0 : index
    %c0_0 = arith.constant 0 : index
    %0 = vector.load %arg1[%c0, %c0_0] : memref<16x16xbf16, #tpu.memory_space<vmem>>, vector<16x16xbf16>
    %c0_1 = arith.constant 0 : index
    %c0_2 = arith.constant 0 : index
    %1 = vector.load %arg2[%c0_1, %c0_2] : memref<16x64xbf16, #tpu.memory_space<vmem>>, vector<16x64xbf16>
    %cst = arith.constant dense<0.000000e+00> : vector<16x64xf32>
    %2 = tpu.matmul %0, %1, %cst {dimension_numbers = #tpu.dot_dimension_numbers<[1], [0], [0], [1], [0, 0, 1, 1], [], []>} : vector<16x16xbf16>, vector<16x64xbf16>, vector<16x64xf32> -> vector<16x64xf32>
    %cst_3 = arith.constant dense<0.000000e+00> : vector<16xf32>
    %3 = vector.multi_reduction <add>, %2, %cst_3 [1] : vector<16x64xf32> to vector<16xf32>
    %4 = vector.shape_cast %3 : vector<16xf32> to vector<16x1xf32>
    %cst_4 = arith.constant 6.400000e+01 : f32
    %5 = vector.broadcast %cst_4 : f32 to vector<16x1xf32>
    %6 = arith.divf %4, %5 : vector<16x1xf32>
    %7 = vector.broadcast %6 : vector<16x1xf32> to vector<16x64xf32>
    %8 = arith.subf %2, %7 : vector<16x64xf32>
    %9 = arith.mulf %8, %8 : vector<16x64xf32>
    %cst_5 = arith.constant dense<0.000000e+00> : vector<16xf32>
    %10 = vector.multi_reduction <add>, %9, %cst_5 [1] : vector<16x64xf32> to vector<16xf32>
    %11 = vector.shape_cast %10 : vector<16xf32> to vector<16x1xf32>
    %cst_6 = arith.constant 6.400000e+01 : f32
    %12 = vector.broadcast %cst_6 : f32 to vector<16x1xf32>
    %13 = arith.divf %11, %12 : vector<16x1xf32>
    %14 = vector.broadcast %6 : vector<16x1xf32> to vector<16x64xf32>
    %15 = arith.subf %2, %14 : vector<16x64xf32>
    %cst_7 = arith.constant 9.99999974E-6 : f32
    %16 = vector.broadcast %cst_7 : f32 to vector<16x1xf32>
    %17 = arith.addf %13, %16 : vector<16x1xf32>
    %18 = math.rsqrt %17 : vector<16x1xf32>
    %19 = vector.broadcast %18 : vector<16x1xf32> to vector<16x64xf32>
    %20 = arith.mulf %15, %19 : vector<16x64xf32>
    %c0_8 = arith.constant 0 : index
    %c0_9 = arith.constant 0 : index
    %21 = vector.load %arg3[%c0_8, %c0_9] : memref<1x64xf32, #tpu.memory_space<vmem>>, vector<1x64xf32>
    %22 = vector.broadcast %21 : vector<1x64xf32> to vector<16x64xf32>
    %23 = arith.mulf %20, %22 : vector<16x64xf32>
    %c0_10 = arith.constant 0 : index
    %c0_11 = arith.constant 0 : index
    %24 = vector.load %arg4[%c0_10, %c0_11] : memref<1x64xf32, #tpu.memory_space<vmem>>, vector<1x64xf32>
    %25 = vector.broadcast %24 : vector<1x64xf32> to vector<16x64xf32>
    %26 = arith.addf %23, %25 : vector<16x64xf32>
    %c0_12 = arith.constant 0 : index
    %c0_13 = arith.constant 0 : index
    %27 = vector.load %arg5[%c0_12, %c0_13] : memref<16x64xf32, #tpu.memory_space<vmem>>, vector<16x64xf32>
    tpu.vector_store %arg5[%c0_12, %c0_13], %26 {strides = array<i32>} : memref<16x64xf32, #tpu.memory_space<vmem>>, vector<16x64xf32>,
    return
  }
  func.func @transform_0(%arg0: i32) -> (i32, i32) {
    %c0_i32 = arith.constant 0 : i32
    %c0_i32_0 = arith.constant 0 : i32
    return %arg0, %c0_i32 : i32, i32
  }
  func.func @transform_1(%arg0: i32) -> (i32, i32) {
    %c0_i32 = arith.constant 0 : i32
    %c0_i32_0 = arith.constant 0 : i32
    %c0_i32_1 = arith.constant 0 : i32
    return %c0_i32, %c0_i32_0 : i32, i32
  }
  func.func @transform_2(%arg0: i32) -> (i32, i32) {
    %c0_i32 = arith.constant 0 : i32
    %c0_i32_0 = arith.constant 0 : i32
    %c0_i32_1 = arith.constant 0 : i32
    return %c0_i32, %c0_i32_0 : i32, i32
  }
  func.func @transform_3(%arg0: i32) -> (i32, i32) {
    %c0_i32 = arith.constant 0 : i32
    %c0_i32_0 = arith.constant 0 : i32
    %c0_i32_1 = arith.constant 0 : i32
    return %c0_i32, %c0_i32_0 : i32, i32
  }
  func.func @transform_4(%arg0: i32) -> (i32, i32) {
    %c0_i32 = arith.constant 0 : i32
    %c0_i32_0 = arith.constant 0 : i32
    return %arg0, %c0_i32 : i32, i32
  }
}

module attributes {stable_mosaic.version = 11 : i64} {
  func.func @_decoder_kernel(%arg0: i32, %arg1: i32, %arg2: memref<16x32xbf16, #tpu.memory_space<vmem>>, %arg3: memref<32x24xbf16, #tpu.memory_space<vmem>>, %arg4: memref<1x24xf32, #tpu.memory_space<vmem>>, %arg5: memref<16x24xf32, #tpu.memory_space<vmem>>) attributes {dimension_semantics = [#tpu.dimension_semantics<parallel>, #tpu.dimension_semantics<parallel>], iteration_bounds = array<i64: 1, 1>, scalar_prefetch = 0 : i64, scratch_operands = 0 : i64, tpu.core_type = #tpu.core_type<tc>, window_params = [{transform_indices = @transform_0, window_bounds = array<i64: 16, 32>}, {transform_indices = @transform_1, window_bounds = array<i64: 32, 24>}, {transform_indices = @transform_2, window_bounds = array<i64: 1, 24>}, {transform_indices = @transform_3, window_bounds = array<i64: 16, 24>}]} {
    %c0 = arith.constant 0 : index
    %c0_0 = arith.constant 0 : index
    %0 = vector.load %arg2[%c0, %c0_0] : memref<16x32xbf16, #tpu.memory_space<vmem>>, vector<16x32xbf16>
    %c0_1 = arith.constant 0 : index
    %c0_2 = arith.constant 0 : index
    %1 = vector.load %arg3[%c0_1, %c0_2] : memref<32x24xbf16, #tpu.memory_space<vmem>>, vector<32x24xbf16>
    %cst = arith.constant dense<0.000000e+00> : vector<16x24xf32>
    %2 = tpu.matmul %0, %1, %cst {dimension_numbers = #tpu.dot_dimension_numbers<[1], [0], [0], [1], [0, 0, 1, 1], [], []>} : vector<16x32xbf16>, vector<32x24xbf16>, vector<16x24xf32> -> vector<16x24xf32>
    %c0_3 = arith.constant 0 : index
    %c0_4 = arith.constant 0 : index
    %3 = vector.load %arg4[%c0_3, %c0_4] : memref<1x24xf32, #tpu.memory_space<vmem>>, vector<1x24xf32>
    %4 = vector.broadcast %3 : vector<1x24xf32> to vector<16x24xf32>
    %5 = arith.addf %2, %4 : vector<16x24xf32>
    %c0_5 = arith.constant 0 : index
    %c0_6 = arith.constant 0 : index
    %6 = vector.load %arg5[%c0_5, %c0_6] : memref<16x24xf32, #tpu.memory_space<vmem>>, vector<16x24xf32>
    tpu.vector_store %arg5[%c0_5, %c0_6], %5 {strides = array<i32>} : memref<16x24xf32, #tpu.memory_space<vmem>>, vector<16x24xf32>,
    return
  }
  func.func @transform_0(%arg0: i32, %arg1: i32) -> (i32, i32) {
    %c0_i32 = arith.constant 0 : i32
    %c0_i32_0 = arith.constant 0 : i32
    return %arg0, %c0_i32 : i32, i32
  }
  func.func @transform_1(%arg0: i32, %arg1: i32) -> (i32, i32) {
    %c0_i32 = arith.constant 0 : i32
    %c0_i32_0 = arith.constant 0 : i32
    return %c0_i32, %arg1 : i32, i32
  }
  func.func @transform_2(%arg0: i32, %arg1: i32) -> (i32, i32) {
    %c0_i32 = arith.constant 0 : i32
    %c0_i32_0 = arith.constant 0 : i32
    return %c0_i32, %arg1 : i32, i32
  }
  func.func @transform_3(%arg0: i32, %arg1: i32) -> (i32, i32) {
    %c0_i32 = arith.constant 0 : i32
    return %arg0, %arg1 : i32, i32
  }
}

module attributes {stable_mosaic.version = 11 : i64} {
  func.func @_sligru_kernel(%arg0: i32, %arg1: memref<2x8x64xf32, #tpu.memory_space<vmem>>, %arg2: memref<32x64xbf16, #tpu.memory_space<vmem>>, %arg3: memref<2x8x32xbf16, #tpu.memory_space<vmem>>, %arg4: memref<2x32xf32, #tpu.memory_space<vmem>>) attributes {dimension_semantics = [#tpu.dimension_semantics<arbitrary>], iteration_bounds = array<i64: 1>, scalar_prefetch = 0 : i64, scratch_operands = 1 : i64, tpu.core_type = #tpu.core_type<tc>, window_params = [{transform_indices = @transform_0, window_bounds = array<i64: 2, 8, 64>}, {pipeline_mode = #tpu.pipeline_mode<synchronous>, transform_indices = @transform_1, window_bounds = array<i64: 32, 64>}, {transform_indices = @transform_2, window_bounds = array<i64: 2, 8, 32>}]} {
    %c0_i32 = arith.constant 0 : i32
    %0 = arith.cmpi eq, %arg0, %c0_i32 : i32
    %1 = arith.extui %0 : i1 to i32
    %c0_i32_0 = arith.constant 0 : i32
    %2 = arith.cmpi ne, %1, %c0_i32_0 : i32
    scf.if %2 {
      %cst_126 = arith.constant 0.000000e+00 : f32
      %382 = vector.broadcast %cst_126 : f32 to vector<2x32xf32>
      %c0_127 = arith.constant 0 : index
      %c0_128 = arith.constant 0 : index
      %383 = vector.load %arg4[%c0_127, %c0_128] : memref<2x32xf32, #tpu.memory_space<vmem>>, vector<2x32xf32>
      tpu.vector_store %arg4[%c0_127, %c0_128], %382 {strides = array<i32>} : memref<2x32xf32, #tpu.memory_space<vmem>>, vector<2x32xf32>,
    } else {
    }
    %c0 = arith.constant 0 : index
    %c0_1 = arith.constant 0 : index
    %3 = vector.load %arg2[%c0, %c0_1] : memref<32x64xbf16, #tpu.memory_space<vmem>>, vector<32x64xbf16>
    %c0_2 = arith.constant 0 : index
    %c0_3 = arith.constant 0 : index
    %4 = vector.load %arg4[%c0_2, %c0_3] : memref<2x32xf32, #tpu.memory_space<vmem>>, vector<2x32xf32>
    %c0_i32_4 = arith.constant 0 : i32
    %c0_5 = arith.constant 0 : index
    %5 = arith.index_cast %c0_i32_4 : i32 to index
    %c0_6 = arith.constant 0 : index
    %6 = vector.load %arg1[%c0_5, %5, %c0_6] : memref<2x8x64xf32, #tpu.memory_space<vmem>>, vector<2x1x64xf32>
    %7 = vector.shape_cast %6 : vector<2x1x64xf32> to vector<2x64xf32>
    %8 = arith.truncf %4 : vector<2x32xf32> to vector<2x32xbf16>
    %cst = arith.constant dense<0.000000e+00> : vector<2x64xf32>
    %9 = tpu.matmul %8, %3, %cst {dimension_numbers = #tpu.dot_dimension_numbers<[1], [0], [0], [1], [0, 0, 1, 1], [], []>} : vector<2x32xbf16>, vector<32x64xbf16>, vector<2x64xf32> -> vector<2x64xf32>
    %cst_7 = arith.constant dense<0.000000e+00> : vector<2xf32>
    %10 = vector.multi_reduction <add>, %9, %cst_7 [1] : vector<2x64xf32> to vector<2xf32>
    %11 = vector.shape_cast %10 : vector<2xf32> to vector<2x1xf32>
    %cst_8 = arith.constant 6.400000e+01 : f32
    %12 = vector.broadcast %cst_8 : f32 to vector<2x1xf32>
    %13 = arith.divf %11, %12 : vector<2x1xf32>
    %14 = arith.mulf %9, %9 : vector<2x64xf32>
    %cst_9 = arith.constant dense<0.000000e+00> : vector<2xf32>
    %15 = vector.multi_reduction <add>, %14, %cst_9 [1] : vector<2x64xf32> to vector<2xf32>
    %16 = vector.shape_cast %15 : vector<2xf32> to vector<2x1xf32>
    %cst_10 = arith.constant 6.400000e+01 : f32
    %17 = vector.broadcast %cst_10 : f32 to vector<2x1xf32>
    %18 = arith.divf %16, %17 : vector<2x1xf32>
    %19 = arith.mulf %13, %13 : vector<2x1xf32>
    %20 = arith.subf %18, %19 : vector<2x1xf32>
    %cst_11 = arith.constant 0.000000e+00 : f32
    %21 = vector.broadcast %cst_11 : f32 to vector<2x1xf32>
    %22 = arith.maximumf %20, %21 : vector<2x1xf32>
    %23 = vector.broadcast %13 : vector<2x1xf32> to vector<2x64xf32>
    %24 = arith.subf %9, %23 : vector<2x64xf32>
    %cst_12 = arith.constant 9.99999974E-6 : f32
    %25 = vector.broadcast %cst_12 : f32 to vector<2x1xf32>
    %26 = arith.addf %22, %25 : vector<2x1xf32>
    %27 = math.rsqrt %26 : vector<2x1xf32>
    %28 = vector.broadcast %27 : vector<2x1xf32> to vector<2x64xf32>
    %29 = arith.mulf %24, %28 : vector<2x64xf32>
    %30 = arith.addf %7, %29 : vector<2x64xf32>
    %31 = vector.extract_strided_slice %30 {offsets = [0, 0], sizes = [2, 32], strides = [1, 1]} : vector<2x64xf32> to vector<2x32xf32>
    %32 = vector.extract_strided_slice %30 {offsets = [0, 32], sizes = [2, 32], strides = [1, 1]} : vector<2x64xf32> to vector<2x32xf32>
    %33 = arith.negf %32 : vector<2x32xf32>
    %34 = math.exp %33 : vector<2x32xf32>
    %cst_13 = arith.constant 1.000000e+00 : f32
    %35 = vector.broadcast %cst_13 : f32 to vector<2x32xf32>
    %36 = arith.addf %35, %34 : vector<2x32xf32>
    %37 = arith.divf %35, %36 : vector<2x32xf32>
    %cst_14 = arith.constant 0.000000e+00 : f32
    %38 = vector.broadcast %cst_14 : f32 to vector<2x32xf32>
    %39 = arith.cmpf ogt, %31, %38 : vector<2x32xf32>
    %cst_15 = arith.constant 0.00999999977 : f32
    %40 = vector.broadcast %cst_15 : f32 to vector<2x32xf32>
    %41 = arith.mulf %40, %31 : vector<2x32xf32>
    %42 = arith.select %39, %31, %41 : vector<2x32xi1>, vector<2x32xf32>
    %43 = arith.mulf %37, %4 : vector<2x32xf32>
    %cst_16 = arith.constant 1.000000e+00 : f32
    %44 = vector.broadcast %cst_16 : f32 to vector<2x32xf32>
    %45 = arith.subf %44, %37 : vector<2x32xf32>
    %46 = arith.mulf %45, %42 : vector<2x32xf32>
    %47 = arith.addf %43, %46 : vector<2x32xf32>
    %48 = arith.truncf %47 : vector<2x32xf32> to vector<2x32xbf16>
    %49 = vector.shape_cast %48 : vector<2x32xbf16> to vector<2x1x32xbf16>
    %c0_17 = arith.constant 0 : index
    %50 = arith.index_cast %c0_i32_4 : i32 to index
    %c0_18 = arith.constant 0 : index
    %51 = vector.load %arg3[%c0_17, %50, %c0_18] : memref<2x8x32xbf16, #tpu.memory_space<vmem>>, vector<2x1x32xbf16>
    tpu.vector_store %arg3[%c0_17, %50, %c0_18], %49 {strides = array<i32>} : memref<2x8x32xbf16, #tpu.memory_space<vmem>>, vector<2x1x32xbf16>,
    %c1_i32 = arith.constant 1 : i32
    %c0_19 = arith.constant 0 : index
    %52 = arith.index_cast %c1_i32 : i32 to index
    %c0_20 = arith.constant 0 : index
    %53 = vector.load %arg1[%c0_19, %52, %c0_20] : memref<2x8x64xf32, #tpu.memory_space<vmem>>, vector<2x1x64xf32>
    %54 = vector.shape_cast %53 : vector<2x1x64xf32> to vector<2x64xf32>
    %55 = arith.truncf %47 : vector<2x32xf32> to vector<2x32xbf16>
    %cst_21 = arith.constant dense<0.000000e+00> : vector<2x64xf32>
    %56 = tpu.matmul %55, %3, %cst_21 {dimension_numbers = #tpu.dot_dimension_numbers<[1], [0], [0], [1], [0, 0, 1, 1], [], []>} : vector<2x32xbf16>, vector<32x64xbf16>, vector<2x64xf32> -> vector<2x64xf32>
    %cst_22 = arith.constant dense<0.000000e+00> : vector<2xf32>
    %57 = vector.multi_reduction <add>, %56, %cst_22 [1] : vector<2x64xf32> to vector<2xf32>
    %58 = vector.shape_cast %57 : vector<2xf32> to vector<2x1xf32>
    %cst_23 = arith.constant 6.400000e+01 : f32
    %59 = vector.broadcast %cst_23 : f32 to vector<2x1xf32>
    %60 = arith.divf %58, %59 : vector<2x1xf32>
    %61 = arith.mulf %56, %56 : vector<2x64xf32>
    %cst_24 = arith.constant dense<0.000000e+00> : vector<2xf32>
    %62 = vector.multi_reduction <add>, %61, %cst_24 [1] : vector<2x64xf32> to vector<2xf32>
    %63 = vector.shape_cast %62 : vector<2xf32> to vector<2x1xf32>
    %cst_25 = arith.constant 6.400000e+01 : f32
    %64 = vector.broadcast %cst_25 : f32 to vector<2x1xf32>
    %65 = arith.divf %63, %64 : vector<2x1xf32>
    %66 = arith.mulf %60, %60 : vector<2x1xf32>
    %67 = arith.subf %65, %66 : vector<2x1xf32>
    %cst_26 = arith.constant 0.000000e+00 : f32
    %68 = vector.broadcast %cst_26 : f32 to vector<2x1xf32>
    %69 = arith.maximumf %67, %68 : vector<2x1xf32>
    %70 = vector.broadcast %60 : vector<2x1xf32> to vector<2x64xf32>
    %71 = arith.subf %56, %70 : vector<2x64xf32>
    %cst_27 = arith.constant 9.99999974E-6 : f32
    %72 = vector.broadcast %cst_27 : f32 to vector<2x1xf32>
    %73 = arith.addf %69, %72 : vector<2x1xf32>
    %74 = math.rsqrt %73 : vector<2x1xf32>
    %75 = vector.broadcast %74 : vector<2x1xf32> to vector<2x64xf32>
    %76 = arith.mulf %71, %75 : vector<2x64xf32>
    %77 = arith.addf %54, %76 : vector<2x64xf32>
    %78 = vector.extract_strided_slice %77 {offsets = [0, 0], sizes = [2, 32], strides = [1, 1]} : vector<2x64xf32> to vector<2x32xf32>
    %79 = vector.extract_strided_slice %77 {offsets = [0, 32], sizes = [2, 32], strides = [1, 1]} : vector<2x64xf32> to vector<2x32xf32>
    %80 = arith.negf %79 : vector<2x32xf32>
    %81 = math.exp %80 : vector<2x32xf32>
    %cst_28 = arith.constant 1.000000e+00 : f32
    %82 = vector.broadcast %cst_28 : f32 to vector<2x32xf32>
    %83 = arith.addf %82, %81 : vector<2x32xf32>
    %84 = arith.divf %82, %83 : vector<2x32xf32>
    %cst_29 = arith.constant 0.000000e+00 : f32
    %85 = vector.broadcast %cst_29 : f32 to vector<2x32xf32>
    %86 = arith.cmpf ogt, %78, %85 : vector<2x32xf32>
    %cst_30 = arith.constant 0.00999999977 : f32
    %87 = vector.broadcast %cst_30 : f32 to vector<2x32xf32>
    %88 = arith.mulf %87, %78 : vector<2x32xf32>
    %89 = arith.select %86, %78, %88 : vector<2x32xi1>, vector<2x32xf32>
    %90 = arith.mulf %84, %47 : vector<2x32xf32>
    %cst_31 = arith.constant 1.000000e+00 : f32
    %91 = vector.broadcast %cst_31 : f32 to vector<2x32xf32>
    %92 = arith.subf %91, %84 : vector<2x32xf32>
    %93 = arith.mulf %92, %89 : vector<2x32xf32>
    %94 = arith.addf %90, %93 : vector<2x32xf32>
    %95 = arith.truncf %94 : vector<2x32xf32> to vector<2x32xbf16>
    %96 = vector.shape_cast %95 : vector<2x32xbf16> to vector<2x1x32xbf16>
    %c0_32 = arith.constant 0 : index
    %97 = arith.index_cast %c1_i32 : i32 to index
    %c0_33 = arith.constant 0 : index
    %98 = vector.load %arg3[%c0_32, %97, %c0_33] : memref<2x8x32xbf16, #tpu.memory_space<vmem>>, vector<2x1x32xbf16>
    tpu.vector_store %arg3[%c0_32, %97, %c0_33], %96 {strides = array<i32>} : memref<2x8x32xbf16, #tpu.memory_space<vmem>>, vector<2x1x32xbf16>,
    %c2_i32 = arith.constant 2 : i32
    %c0_34 = arith.constant 0 : index
    %99 = arith.index_cast %c2_i32 : i32 to index
    %c0_35 = arith.constant 0 : index
    %100 = vector.load %arg1[%c0_34, %99, %c0_35] : memref<2x8x64xf32, #tpu.memory_space<vmem>>, vector<2x1x64xf32>
    %101 = vector.shape_cast %100 : vector<2x1x64xf32> to vector<2x64xf32>
    %102 = arith.truncf %94 : vector<2x32xf32> to vector<2x32xbf16>
    %cst_36 = arith.constant dense<0.000000e+00> : vector<2x64xf32>
    %103 = tpu.matmul %102, %3, %cst_36 {dimension_numbers = #tpu.dot_dimension_numbers<[1], [0], [0], [1], [0, 0, 1, 1], [], []>} : vector<2x32xbf16>, vector<32x64xbf16>, vector<2x64xf32> -> vector<2x64xf32>
    %cst_37 = arith.constant dense<0.000000e+00> : vector<2xf32>
    %104 = vector.multi_reduction <add>, %103, %cst_37 [1] : vector<2x64xf32> to vector<2xf32>
    %105 = vector.shape_cast %104 : vector<2xf32> to vector<2x1xf32>
    %cst_38 = arith.constant 6.400000e+01 : f32
    %106 = vector.broadcast %cst_38 : f32 to vector<2x1xf32>
    %107 = arith.divf %105, %106 : vector<2x1xf32>
    %108 = arith.mulf %103, %103 : vector<2x64xf32>
    %cst_39 = arith.constant dense<0.000000e+00> : vector<2xf32>
    %109 = vector.multi_reduction <add>, %108, %cst_39 [1] : vector<2x64xf32> to vector<2xf32>
    %110 = vector.shape_cast %109 : vector<2xf32> to vector<2x1xf32>
    %cst_40 = arith.constant 6.400000e+01 : f32
    %111 = vector.broadcast %cst_40 : f32 to vector<2x1xf32>
    %112 = arith.divf %110, %111 : vector<2x1xf32>
    %113 = arith.mulf %107, %107 : vector<2x1xf32>
    %114 = arith.subf %112, %113 : vector<2x1xf32>
    %cst_41 = arith.constant 0.000000e+00 : f32
    %115 = vector.broadcast %cst_41 : f32 to vector<2x1xf32>
    %116 = arith.maximumf %114, %115 : vector<2x1xf32>
    %117 = vector.broadcast %107 : vector<2x1xf32> to vector<2x64xf32>
    %118 = arith.subf %103, %117 : vector<2x64xf32>
    %cst_42 = arith.constant 9.99999974E-6 : f32
    %119 = vector.broadcast %cst_42 : f32 to vector<2x1xf32>
    %120 = arith.addf %116, %119 : vector<2x1xf32>
    %121 = math.rsqrt %120 : vector<2x1xf32>
    %122 = vector.broadcast %121 : vector<2x1xf32> to vector<2x64xf32>
    %123 = arith.mulf %118, %122 : vector<2x64xf32>
    %124 = arith.addf %101, %123 : vector<2x64xf32>
    %125 = vector.extract_strided_slice %124 {offsets = [0, 0], sizes = [2, 32], strides = [1, 1]} : vector<2x64xf32> to vector<2x32xf32>
    %126 = vector.extract_strided_slice %124 {offsets = [0, 32], sizes = [2, 32], strides = [1, 1]} : vector<2x64xf32> to vector<2x32xf32>
    %127 = arith.negf %126 : vector<2x32xf32>
    %128 = math.exp %127 : vector<2x32xf32>
    %cst_43 = arith.constant 1.000000e+00 : f32
    %129 = vector.broadcast %cst_43 : f32 to vector<2x32xf32>
    %130 = arith.addf %129, %128 : vector<2x32xf32>
    %131 = arith.divf %129, %130 : vector<2x32xf32>
    %cst_44 = arith.constant 0.000000e+00 : f32
    %132 = vector.broadcast %cst_44 : f32 to vector<2x32xf32>
    %133 = arith.cmpf ogt, %125, %132 : vector<2x32xf32>
    %cst_45 = arith.constant 0.00999999977 : f32
    %134 = vector.broadcast %cst_45 : f32 to vector<2x32xf32>
    %135 = arith.mulf %134, %125 : vector<2x32xf32>
    %136 = arith.select %133, %125, %135 : vector<2x32xi1>, vector<2x32xf32>
    %137 = arith.mulf %131, %94 : vector<2x32xf32>
    %cst_46 = arith.constant 1.000000e+00 : f32
    %138 = vector.broadcast %cst_46 : f32 to vector<2x32xf32>
    %139 = arith.subf %138, %131 : vector<2x32xf32>
    %140 = arith.mulf %139, %136 : vector<2x32xf32>
    %141 = arith.addf %137, %140 : vector<2x32xf32>
    %142 = arith.truncf %141 : vector<2x32xf32> to vector<2x32xbf16>
    %143 = vector.shape_cast %142 : vector<2x32xbf16> to vector<2x1x32xbf16>
    %c0_47 = arith.constant 0 : index
    %144 = arith.index_cast %c2_i32 : i32 to index
    %c0_48 = arith.constant 0 : index
    %145 = vector.load %arg3[%c0_47, %144, %c0_48] : memref<2x8x32xbf16, #tpu.memory_space<vmem>>, vector<2x1x32xbf16>
    tpu.vector_store %arg3[%c0_47, %144, %c0_48], %143 {strides = array<i32>} : memref<2x8x32xbf16, #tpu.memory_space<vmem>>, vector<2x1x32xbf16>,
    %c3_i32 = arith.constant 3 : i32
    %c0_49 = arith.constant 0 : index
    %146 = arith.index_cast %c3_i32 : i32 to index
    %c0_50 = arith.constant 0 : index
    %147 = vector.load %arg1[%c0_49, %146, %c0_50] : memref<2x8x64xf32, #tpu.memory_space<vmem>>, vector<2x1x64xf32>
    %148 = vector.shape_cast %147 : vector<2x1x64xf32> to vector<2x64xf32>
    %149 = arith.truncf %141 : vector<2x32xf32> to vector<2x32xbf16>
    %cst_51 = arith.constant dense<0.000000e+00> : vector<2x64xf32>
    %150 = tpu.matmul %149, %3, %cst_51 {dimension_numbers = #tpu.dot_dimension_numbers<[1], [0], [0], [1], [0, 0, 1, 1], [], []>} : vector<2x32xbf16>, vector<32x64xbf16>, vector<2x64xf32> -> vector<2x64xf32>
    %cst_52 = arith.constant dense<0.000000e+00> : vector<2xf32>
    %151 = vector.multi_reduction <add>, %150, %cst_52 [1] : vector<2x64xf32> to vector<2xf32>
    %152 = vector.shape_cast %151 : vector<2xf32> to vector<2x1xf32>
    %cst_53 = arith.constant 6.400000e+01 : f32
    %153 = vector.broadcast %cst_53 : f32 to vector<2x1xf32>
    %154 = arith.divf %152, %153 : vector<2x1xf32>
    %155 = arith.mulf %150, %150 : vector<2x64xf32>
    %cst_54 = arith.constant dense<0.000000e+00> : vector<2xf32>
    %156 = vector.multi_reduction <add>, %155, %cst_54 [1] : vector<2x64xf32> to vector<2xf32>
    %157 = vector.shape_cast %156 : vector<2xf32> to vector<2x1xf32>
    %cst_55 = arith.constant 6.400000e+01 : f32
    %158 = vector.broadcast %cst_55 : f32 to vector<2x1xf32>
    %159 = arith.divf %157, %158 : vector<2x1xf32>
    %160 = arith.mulf %154, %154 : vector<2x1xf32>
    %161 = arith.subf %159, %160 : vector<2x1xf32>
    %cst_56 = arith.constant 0.000000e+00 : f32
    %162 = vector.broadcast %cst_56 : f32 to vector<2x1xf32>
    %163 = arith.maximumf %161, %162 : vector<2x1xf32>
    %164 = vector.broadcast %154 : vector<2x1xf32> to vector<2x64xf32>
    %165 = arith.subf %150, %164 : vector<2x64xf32>
    %cst_57 = arith.constant 9.99999974E-6 : f32
    %166 = vector.broadcast %cst_57 : f32 to vector<2x1xf32>
    %167 = arith.addf %163, %166 : vector<2x1xf32>
    %168 = math.rsqrt %167 : vector<2x1xf32>
    %169 = vector.broadcast %168 : vector<2x1xf32> to vector<2x64xf32>
    %170 = arith.mulf %165, %169 : vector<2x64xf32>
    %171 = arith.addf %148, %170 : vector<2x64xf32>
    %172 = vector.extract_strided_slice %171 {offsets = [0, 0], sizes = [2, 32], strides = [1, 1]} : vector<2x64xf32> to vector<2x32xf32>
    %173 = vector.extract_strided_slice %171 {offsets = [0, 32], sizes = [2, 32], strides = [1, 1]} : vector<2x64xf32> to vector<2x32xf32>
    %174 = arith.negf %173 : vector<2x32xf32>
    %175 = math.exp %174 : vector<2x32xf32>
    %cst_58 = arith.constant 1.000000e+00 : f32
    %176 = vector.broadcast %cst_58 : f32 to vector<2x32xf32>
    %177 = arith.addf %176, %175 : vector<2x32xf32>
    %178 = arith.divf %176, %177 : vector<2x32xf32>
    %cst_59 = arith.constant 0.000000e+00 : f32
    %179 = vector.broadcast %cst_59 : f32 to vector<2x32xf32>
    %180 = arith.cmpf ogt, %172, %179 : vector<2x32xf32>
    %cst_60 = arith.constant 0.00999999977 : f32
    %181 = vector.broadcast %cst_60 : f32 to vector<2x32xf32>
    %182 = arith.mulf %181, %172 : vector<2x32xf32>
    %183 = arith.select %180, %172, %182 : vector<2x32xi1>, vector<2x32xf32>
    %184 = arith.mulf %178, %141 : vector<2x32xf32>
    %cst_61 = arith.constant 1.000000e+00 : f32
    %185 = vector.broadcast %cst_61 : f32 to vector<2x32xf32>
    %186 = arith.subf %185, %178 : vector<2x32xf32>
    %187 = arith.mulf %186, %183 : vector<2x32xf32>
    %188 = arith.addf %184, %187 : vector<2x32xf32>
    %189 = arith.truncf %188 : vector<2x32xf32> to vector<2x32xbf16>
    %190 = vector.shape_cast %189 : vector<2x32xbf16> to vector<2x1x32xbf16>
    %c0_62 = arith.constant 0 : index
    %191 = arith.index_cast %c3_i32 : i32 to index
    %c0_63 = arith.constant 0 : index
    %192 = vector.load %arg3[%c0_62, %191, %c0_63] : memref<2x8x32xbf16, #tpu.memory_space<vmem>>, vector<2x1x32xbf16>
    tpu.vector_store %arg3[%c0_62, %191, %c0_63], %190 {strides = array<i32>} : memref<2x8x32xbf16, #tpu.memory_space<vmem>>, vector<2x1x32xbf16>,
    %c4_i32 = arith.constant 4 : i32
    %c0_64 = arith.constant 0 : index
    %193 = arith.index_cast %c4_i32 : i32 to index
    %c0_65 = arith.constant 0 : index
    %194 = vector.load %arg1[%c0_64, %193, %c0_65] : memref<2x8x64xf32, #tpu.memory_space<vmem>>, vector<2x1x64xf32>
    %195 = vector.shape_cast %194 : vector<2x1x64xf32> to vector<2x64xf32>
    %196 = arith.truncf %188 : vector<2x32xf32> to vector<2x32xbf16>
    %cst_66 = arith.constant dense<0.000000e+00> : vector<2x64xf32>
    %197 = tpu.matmul %196, %3, %cst_66 {dimension_numbers = #tpu.dot_dimension_numbers<[1], [0], [0], [1], [0, 0, 1, 1], [], []>} : vector<2x32xbf16>, vector<32x64xbf16>, vector<2x64xf32> -> vector<2x64xf32>
    %cst_67 = arith.constant dense<0.000000e+00> : vector<2xf32>
    %198 = vector.multi_reduction <add>, %197, %cst_67 [1] : vector<2x64xf32> to vector<2xf32>
    %199 = vector.shape_cast %198 : vector<2xf32> to vector<2x1xf32>
    %cst_68 = arith.constant 6.400000e+01 : f32
    %200 = vector.broadcast %cst_68 : f32 to vector<2x1xf32>
    %201 = arith.divf %199, %200 : vector<2x1xf32>
    %202 = arith.mulf %197, %197 : vector<2x64xf32>
    %cst_69 = arith.constant dense<0.000000e+00> : vector<2xf32>
    %203 = vector.multi_reduction <add>, %202, %cst_69 [1] : vector<2x64xf32> to vector<2xf32>
    %204 = vector.shape_cast %203 : vector<2xf32> to vector<2x1xf32>
    %cst_70 = arith.constant 6.400000e+01 : f32
    %205 = vector.broadcast %cst_70 : f32 to vector<2x1xf32>
    %206 = arith.divf %204, %205 : vector<2x1xf32>
    %207 = arith.mulf %201, %201 : vector<2x1xf32>
    %208 = arith.subf %206, %207 : vector<2x1xf32>
    %cst_71 = arith.constant 0.000000e+00 : f32
    %209 = vector.broadcast %cst_71 : f32 to vector<2x1xf32>
    %210 = arith.maximumf %208, %209 : vector<2x1xf32>
    %211 = vector.broadcast %201 : vector<2x1xf32> to vector<2x64xf32>
    %212 = arith.subf %197, %211 : vector<2x64xf32>
    %cst_72 = arith.constant 9.99999974E-6 : f32
    %213 = vector.broadcast %cst_72 : f32 to vector<2x1xf32>
    %214 = arith.addf %210, %213 : vector<2x1xf32>
    %215 = math.rsqrt %214 : vector<2x1xf32>
    %216 = vector.broadcast %215 : vector<2x1xf32> to vector<2x64xf32>
    %217 = arith.mulf %212, %216 : vector<2x64xf32>
    %218 = arith.addf %195, %217 : vector<2x64xf32>
    %219 = vector.extract_strided_slice %218 {offsets = [0, 0], sizes = [2, 32], strides = [1, 1]} : vector<2x64xf32> to vector<2x32xf32>
    %220 = vector.extract_strided_slice %218 {offsets = [0, 32], sizes = [2, 32], strides = [1, 1]} : vector<2x64xf32> to vector<2x32xf32>
    %221 = arith.negf %220 : vector<2x32xf32>
    %222 = math.exp %221 : vector<2x32xf32>
    %cst_73 = arith.constant 1.000000e+00 : f32
    %223 = vector.broadcast %cst_73 : f32 to vector<2x32xf32>
    %224 = arith.addf %223, %222 : vector<2x32xf32>
    %225 = arith.divf %223, %224 : vector<2x32xf32>
    %cst_74 = arith.constant 0.000000e+00 : f32
    %226 = vector.broadcast %cst_74 : f32 to vector<2x32xf32>
    %227 = arith.cmpf ogt, %219, %226 : vector<2x32xf32>
    %cst_75 = arith.constant 0.00999999977 : f32
    %228 = vector.broadcast %cst_75 : f32 to vector<2x32xf32>
    %229 = arith.mulf %228, %219 : vector<2x32xf32>
    %230 = arith.select %227, %219, %229 : vector<2x32xi1>, vector<2x32xf32>
    %231 = arith.mulf %225, %188 : vector<2x32xf32>
    %cst_76 = arith.constant 1.000000e+00 : f32
    %232 = vector.broadcast %cst_76 : f32 to vector<2x32xf32>
    %233 = arith.subf %232, %225 : vector<2x32xf32>
    %234 = arith.mulf %233, %230 : vector<2x32xf32>
    %235 = arith.addf %231, %234 : vector<2x32xf32>
    %236 = arith.truncf %235 : vector<2x32xf32> to vector<2x32xbf16>
    %237 = vector.shape_cast %236 : vector<2x32xbf16> to vector<2x1x32xbf16>
    %c0_77 = arith.constant 0 : index
    %238 = arith.index_cast %c4_i32 : i32 to index
    %c0_78 = arith.constant 0 : index
    %239 = vector.load %arg3[%c0_77, %238, %c0_78] : memref<2x8x32xbf16, #tpu.memory_space<vmem>>, vector<2x1x32xbf16>
    tpu.vector_store %arg3[%c0_77, %238, %c0_78], %237 {strides = array<i32>} : memref<2x8x32xbf16, #tpu.memory_space<vmem>>, vector<2x1x32xbf16>,
    %c5_i32 = arith.constant 5 : i32
    %c0_79 = arith.constant 0 : index
    %240 = arith.index_cast %c5_i32 : i32 to index
    %c0_80 = arith.constant 0 : index
    %241 = vector.load %arg1[%c0_79, %240, %c0_80] : memref<2x8x64xf32, #tpu.memory_space<vmem>>, vector<2x1x64xf32>
    %242 = vector.shape_cast %241 : vector<2x1x64xf32> to vector<2x64xf32>
    %243 = arith.truncf %235 : vector<2x32xf32> to vector<2x32xbf16>
    %cst_81 = arith.constant dense<0.000000e+00> : vector<2x64xf32>
    %244 = tpu.matmul %243, %3, %cst_81 {dimension_numbers = #tpu.dot_dimension_numbers<[1], [0], [0], [1], [0, 0, 1, 1], [], []>} : vector<2x32xbf16>, vector<32x64xbf16>, vector<2x64xf32> -> vector<2x64xf32>
    %cst_82 = arith.constant dense<0.000000e+00> : vector<2xf32>
    %245 = vector.multi_reduction <add>, %244, %cst_82 [1] : vector<2x64xf32> to vector<2xf32>
    %246 = vector.shape_cast %245 : vector<2xf32> to vector<2x1xf32>
    %cst_83 = arith.constant 6.400000e+01 : f32
    %247 = vector.broadcast %cst_83 : f32 to vector<2x1xf32>
    %248 = arith.divf %246, %247 : vector<2x1xf32>
    %249 = arith.mulf %244, %244 : vector<2x64xf32>
    %cst_84 = arith.constant dense<0.000000e+00> : vector<2xf32>
    %250 = vector.multi_reduction <add>, %249, %cst_84 [1] : vector<2x64xf32> to vector<2xf32>
    %251 = vector.shape_cast %250 : vector<2xf32> to vector<2x1xf32>
    %cst_85 = arith.constant 6.400000e+01 : f32
    %252 = vector.broadcast %cst_85 : f32 to vector<2x1xf32>
    %253 = arith.divf %251, %252 : vector<2x1xf32>
    %254 = arith.mulf %248, %248 : vector<2x1xf32>
    %255 = arith.subf %253, %254 : vector<2x1xf32>
    %cst_86 = arith.constant 0.000000e+00 : f32
    %256 = vector.broadcast %cst_86 : f32 to vector<2x1xf32>
    %257 = arith.maximumf %255, %256 : vector<2x1xf32>
    %258 = vector.broadcast %248 : vector<2x1xf32> to vector<2x64xf32>
    %259 = arith.subf %244, %258 : vector<2x64xf32>
    %cst_87 = arith.constant 9.99999974E-6 : f32
    %260 = vector.broadcast %cst_87 : f32 to vector<2x1xf32>
    %261 = arith.addf %257, %260 : vector<2x1xf32>
    %262 = math.rsqrt %261 : vector<2x1xf32>
    %263 = vector.broadcast %262 : vector<2x1xf32> to vector<2x64xf32>
    %264 = arith.mulf %259, %263 : vector<2x64xf32>
    %265 = arith.addf %242, %264 : vector<2x64xf32>
    %266 = vector.extract_strided_slice %265 {offsets = [0, 0], sizes = [2, 32], strides = [1, 1]} : vector<2x64xf32> to vector<2x32xf32>
    %267 = vector.extract_strided_slice %265 {offsets = [0, 32], sizes = [2, 32], strides = [1, 1]} : vector<2x64xf32> to vector<2x32xf32>
    %268 = arith.negf %267 : vector<2x32xf32>
    %269 = math.exp %268 : vector<2x32xf32>
    %cst_88 = arith.constant 1.000000e+00 : f32
    %270 = vector.broadcast %cst_88 : f32 to vector<2x32xf32>
    %271 = arith.addf %270, %269 : vector<2x32xf32>
    %272 = arith.divf %270, %271 : vector<2x32xf32>
    %cst_89 = arith.constant 0.000000e+00 : f32
    %273 = vector.broadcast %cst_89 : f32 to vector<2x32xf32>
    %274 = arith.cmpf ogt, %266, %273 : vector<2x32xf32>
    %cst_90 = arith.constant 0.00999999977 : f32
    %275 = vector.broadcast %cst_90 : f32 to vector<2x32xf32>
    %276 = arith.mulf %275, %266 : vector<2x32xf32>
    %277 = arith.select %274, %266, %276 : vector<2x32xi1>, vector<2x32xf32>
    %278 = arith.mulf %272, %235 : vector<2x32xf32>
    %cst_91 = arith.constant 1.000000e+00 : f32
    %279 = vector.broadcast %cst_91 : f32 to vector<2x32xf32>
    %280 = arith.subf %279, %272 : vector<2x32xf32>
    %281 = arith.mulf %280, %277 : vector<2x32xf32>
    %282 = arith.addf %278, %281 : vector<2x32xf32>
    %283 = arith.truncf %282 : vector<2x32xf32> to vector<2x32xbf16>
    %284 = vector.shape_cast %283 : vector<2x32xbf16> to vector<2x1x32xbf16>
    %c0_92 = arith.constant 0 : index
    %285 = arith.index_cast %c5_i32 : i32 to index
    %c0_93 = arith.constant 0 : index
    %286 = vector.load %arg3[%c0_92, %285, %c0_93] : memref<2x8x32xbf16, #tpu.memory_space<vmem>>, vector<2x1x32xbf16>
    tpu.vector_store %arg3[%c0_92, %285, %c0_93], %284 {strides = array<i32>} : memref<2x8x32xbf16, #tpu.memory_space<vmem>>, vector<2x1x32xbf16>,
    %c6_i32 = arith.constant 6 : i32
    %c0_94 = arith.constant 0 : index
    %287 = arith.index_cast %c6_i32 : i32 to index
    %c0_95 = arith.constant 0 : index
    %288 = vector.load %arg1[%c0_94, %287, %c0_95] : memref<2x8x64xf32, #tpu.memory_space<vmem>>, vector<2x1x64xf32>
    %289 = vector.shape_cast %288 : vector<2x1x64xf32> to vector<2x64xf32>
    %290 = arith.truncf %282 : vector<2x32xf32> to vector<2x32xbf16>
    %cst_96 = arith.constant dense<0.000000e+00> : vector<2x64xf32>
    %291 = tpu.matmul %290, %3, %cst_96 {dimension_numbers = #tpu.dot_dimension_numbers<[1], [0], [0], [1], [0, 0, 1, 1], [], []>} : vector<2x32xbf16>, vector<32x64xbf16>, vector<2x64xf32> -> vector<2x64xf32>
    %cst_97 = arith.constant dense<0.000000e+00> : vector<2xf32>
    %292 = vector.multi_reduction <add>, %291, %cst_97 [1] : vector<2x64xf32> to vector<2xf32>
    %293 = vector.shape_cast %292 : vector<2xf32> to vector<2x1xf32>
    %cst_98 = arith.constant 6.400000e+01 : f32
    %294 = vector.broadcast %cst_98 : f32 to vector<2x1xf32>
    %295 = arith.divf %293, %294 : vector<2x1xf32>
    %296 = arith.mulf %291, %291 : vector<2x64xf32>
    %cst_99 = arith.constant dense<0.000000e+00> : vector<2xf32>
    %297 = vector.multi_reduction <add>, %296, %cst_99 [1] : vector<2x64xf32> to vector<2xf32>
    %298 = vector.shape_cast %297 : vector<2xf32> to vector<2x1xf32>
    %cst_100 = arith.constant 6.400000e+01 : f32
    %299 = vector.broadcast %cst_100 : f32 to vector<2x1xf32>
    %300 = arith.divf %298, %299 : vector<2x1xf32>
    %301 = arith.mulf %295, %295 : vector<2x1xf32>
    %302 = arith.subf %300, %301 : vector<2x1xf32>
    %cst_101 = arith.constant 0.000000e+00 : f32
    %303 = vector.broadcast %cst_101 : f32 to vector<2x1xf32>
    %304 = arith.maximumf %302, %303 : vector<2x1xf32>
    %305 = vector.broadcast %295 : vector<2x1xf32> to vector<2x64xf32>
    %306 = arith.subf %291, %305 : vector<2x64xf32>
    %cst_102 = arith.constant 9.99999974E-6 : f32
    %307 = vector.broadcast %cst_102 : f32 to vector<2x1xf32>
    %308 = arith.addf %304, %307 : vector<2x1xf32>
    %309 = math.rsqrt %308 : vector<2x1xf32>
    %310 = vector.broadcast %309 : vector<2x1xf32> to vector<2x64xf32>
    %311 = arith.mulf %306, %310 : vector<2x64xf32>
    %312 = arith.addf %289, %311 : vector<2x64xf32>
    %313 = vector.extract_strided_slice %312 {offsets = [0, 0], sizes = [2, 32], strides = [1, 1]} : vector<2x64xf32> to vector<2x32xf32>
    %314 = vector.extract_strided_slice %312 {offsets = [0, 32], sizes = [2, 32], strides = [1, 1]} : vector<2x64xf32> to vector<2x32xf32>
    %315 = arith.negf %314 : vector<2x32xf32>
    %316 = math.exp %315 : vector<2x32xf32>
    %cst_103 = arith.constant 1.000000e+00 : f32
    %317 = vector.broadcast %cst_103 : f32 to vector<2x32xf32>
    %318 = arith.addf %317, %316 : vector<2x32xf32>
    %319 = arith.divf %317, %318 : vector<2x32xf32>
    %cst_104 = arith.constant 0.000000e+00 : f32
    %320 = vector.broadcast %cst_104 : f32 to vector<2x32xf32>
    %321 = arith.cmpf ogt, %313, %320 : vector<2x32xf32>
    %cst_105 = arith.constant 0.00999999977 : f32
    %322 = vector.broadcast %cst_105 : f32 to vector<2x32xf32>
    %323 = arith.mulf %322, %313 : vector<2x32xf32>
    %324 = arith.select %321, %313, %323 : vector<2x32xi1>, vector<2x32xf32>
    %325 = arith.mulf %319, %282 : vector<2x32xf32>
    %cst_106 = arith.constant 1.000000e+00 : f32
    %326 = vector.broadcast %cst_106 : f32 to vector<2x32xf32>
    %327 = arith.subf %326, %319 : vector<2x32xf32>
    %328 = arith.mulf %327, %324 : vector<2x32xf32>
    %329 = arith.addf %325, %328 : vector<2x32xf32>
    %330 = arith.truncf %329 : vector<2x32xf32> to vector<2x32xbf16>
    %331 = vector.shape_cast %330 : vector<2x32xbf16> to vector<2x1x32xbf16>
    %c0_107 = arith.constant 0 : index
    %332 = arith.index_cast %c6_i32 : i32 to index
    %c0_108 = arith.constant 0 : index
    %333 = vector.load %arg3[%c0_107, %332, %c0_108] : memref<2x8x32xbf16, #tpu.memory_space<vmem>>, vector<2x1x32xbf16>
    tpu.vector_store %arg3[%c0_107, %332, %c0_108], %331 {strides = array<i32>} : memref<2x8x32xbf16, #tpu.memory_space<vmem>>, vector<2x1x32xbf16>,
    %c7_i32 = arith.constant 7 : i32
    %c0_109 = arith.constant 0 : index
    %334 = arith.index_cast %c7_i32 : i32 to index
    %c0_110 = arith.constant 0 : index
    %335 = vector.load %arg1[%c0_109, %334, %c0_110] : memref<2x8x64xf32, #tpu.memory_space<vmem>>, vector<2x1x64xf32>
    %336 = vector.shape_cast %335 : vector<2x1x64xf32> to vector<2x64xf32>
    %337 = arith.truncf %329 : vector<2x32xf32> to vector<2x32xbf16>
    %cst_111 = arith.constant dense<0.000000e+00> : vector<2x64xf32>
    %338 = tpu.matmul %337, %3, %cst_111 {dimension_numbers = #tpu.dot_dimension_numbers<[1], [0], [0], [1], [0, 0, 1, 1], [], []>} : vector<2x32xbf16>, vector<32x64xbf16>, vector<2x64xf32> -> vector<2x64xf32>
    %cst_112 = arith.constant dense<0.000000e+00> : vector<2xf32>
    %339 = vector.multi_reduction <add>, %338, %cst_112 [1] : vector<2x64xf32> to vector<2xf32>
    %340 = vector.shape_cast %339 : vector<2xf32> to vector<2x1xf32>
    %cst_113 = arith.constant 6.400000e+01 : f32
    %341 = vector.broadcast %cst_113 : f32 to vector<2x1xf32>
    %342 = arith.divf %340, %341 : vector<2x1xf32>
    %343 = arith.mulf %338, %338 : vector<2x64xf32>
    %cst_114 = arith.constant dense<0.000000e+00> : vector<2xf32>
    %344 = vector.multi_reduction <add>, %343, %cst_114 [1] : vector<2x64xf32> to vector<2xf32>
    %345 = vector.shape_cast %344 : vector<2xf32> to vector<2x1xf32>
    %cst_115 = arith.constant 6.400000e+01 : f32
    %346 = vector.broadcast %cst_115 : f32 to vector<2x1xf32>
    %347 = arith.divf %345, %346 : vector<2x1xf32>
    %348 = arith.mulf %342, %342 : vector<2x1xf32>
    %349 = arith.subf %347, %348 : vector<2x1xf32>
    %cst_116 = arith.constant 0.000000e+00 : f32
    %350 = vector.broadcast %cst_116 : f32 to vector<2x1xf32>
    %351 = arith.maximumf %349, %350 : vector<2x1xf32>
    %352 = vector.broadcast %342 : vector<2x1xf32> to vector<2x64xf32>
    %353 = arith.subf %338, %352 : vector<2x64xf32>
    %cst_117 = arith.constant 9.99999974E-6 : f32
    %354 = vector.broadcast %cst_117 : f32 to vector<2x1xf32>
    %355 = arith.addf %351, %354 : vector<2x1xf32>
    %356 = math.rsqrt %355 : vector<2x1xf32>
    %357 = vector.broadcast %356 : vector<2x1xf32> to vector<2x64xf32>
    %358 = arith.mulf %353, %357 : vector<2x64xf32>
    %359 = arith.addf %336, %358 : vector<2x64xf32>
    %360 = vector.extract_strided_slice %359 {offsets = [0, 0], sizes = [2, 32], strides = [1, 1]} : vector<2x64xf32> to vector<2x32xf32>
    %361 = vector.extract_strided_slice %359 {offsets = [0, 32], sizes = [2, 32], strides = [1, 1]} : vector<2x64xf32> to vector<2x32xf32>
    %362 = arith.negf %361 : vector<2x32xf32>
    %363 = math.exp %362 : vector<2x32xf32>
    %cst_118 = arith.constant 1.000000e+00 : f32
    %364 = vector.broadcast %cst_118 : f32 to vector<2x32xf32>
    %365 = arith.addf %364, %363 : vector<2x32xf32>
    %366 = arith.divf %364, %365 : vector<2x32xf32>
    %cst_119 = arith.constant 0.000000e+00 : f32
    %367 = vector.broadcast %cst_119 : f32 to vector<2x32xf32>
    %368 = arith.cmpf ogt, %360, %367 : vector<2x32xf32>
    %cst_120 = arith.constant 0.00999999977 : f32
    %369 = vector.broadcast %cst_120 : f32 to vector<2x32xf32>
    %370 = arith.mulf %369, %360 : vector<2x32xf32>
    %371 = arith.select %368, %360, %370 : vector<2x32xi1>, vector<2x32xf32>
    %372 = arith.mulf %366, %329 : vector<2x32xf32>
    %cst_121 = arith.constant 1.000000e+00 : f32
    %373 = vector.broadcast %cst_121 : f32 to vector<2x32xf32>
    %374 = arith.subf %373, %366 : vector<2x32xf32>
    %375 = arith.mulf %374, %371 : vector<2x32xf32>
    %376 = arith.addf %372, %375 : vector<2x32xf32>
    %377 = arith.truncf %376 : vector<2x32xf32> to vector<2x32xbf16>
    %378 = vector.shape_cast %377 : vector<2x32xbf16> to vector<2x1x32xbf16>
    %c0_122 = arith.constant 0 : index
    %379 = arith.index_cast %c7_i32 : i32 to index
    %c0_123 = arith.constant 0 : index
    %380 = vector.load %arg3[%c0_122, %379, %c0_123] : memref<2x8x32xbf16, #tpu.memory_space<vmem>>, vector<2x1x32xbf16>
    tpu.vector_store %arg3[%c0_122, %379, %c0_123], %378 {strides = array<i32>} : memref<2x8x32xbf16, #tpu.memory_space<vmem>>, vector<2x1x32xbf16>,
    %c8_i32 = arith.constant 8 : i32
    %c0_124 = arith.constant 0 : index
    %c0_125 = arith.constant 0 : index
    %381 = vector.load %arg4[%c0_124, %c0_125] : memref<2x32xf32, #tpu.memory_space<vmem>>, vector<2x32xf32>
    tpu.vector_store %arg4[%c0_124, %c0_125], %376 {strides = array<i32>} : memref<2x32xf32, #tpu.memory_space<vmem>>, vector<2x32xf32>,
    return
  }
  func.func @transform_0(%arg0: i32) -> (i32, i32, i32) {
    %c0_i32 = arith.constant 0 : i32
    %c0_i32_0 = arith.constant 0 : i32
    %c0_i32_1 = arith.constant 0 : i32
    return %c0_i32, %arg0, %c0_i32_0 : i32, i32, i32
  }
  func.func @transform_1(%arg0: i32) -> (i32, i32) {
    %c0_i32 = arith.constant 0 : i32
    %c0_i32_0 = arith.constant 0 : i32
    %c0_i32_1 = arith.constant 0 : i32
    return %c0_i32, %c0_i32_0 : i32, i32
  }
  func.func @transform_2(%arg0: i32) -> (i32, i32, i32) {
    %c0_i32 = arith.constant 0 : i32
    %c0_i32_0 = arith.constant 0 : i32
    %c0_i32_1 = arith.constant 0 : i32
    return %c0_i32, %arg0, %c0_i32_0 : i32, i32, i32
  }
}

</mosaic_0001>

<bundles_post_ra>
// kernel: sligru_rnnt_forward.3
= control target key start
LH: loop header
LB: loop body
LE: loop exit
PB: predicated region body
PF: predicated region fallthrough
CT: control target
= control target key end

     0   :  { %v151_v0 = vmov 0.0   ;;  %vm152_vm0 = vmmov 0   ;;  %vm33_vm1 = vcmask 130048   ;;  %vm78_vm2 = vcmask 523264   ;;  %s202_s1 = inlined_call_operand.vmem [shape: bf16[16,64], index: 1, kind: input, shape index: {}]   ;;  %s203_s0 = inlined_call_operand.vmem [shape: bf16[16,16], index: 0, kind: input, shape index: {}]   ;;  %s204_s2 = inlined_call_operand.vmem [shape: f32[1,64], index: 2, kind: input, shape index: {}]   ;;  %s205_s3 = inlined_call_operand.vmem [shape: f32[1,64], index: 3, kind: input, shape index: {}]   ;;  %s206_s4 = inlined_call_operand.vmem [shape: f32[16,64], index: 4, kind: output, shape index: {}]  }
   0x1   :  { %137 = vmatprep.subr.bf16.mxu0 %v151_v0  ;;  %v145_v1 = vld [vmem:[%s202_s1] sm:$0xff]   ;;  %139 = vmatprep.mubr.msk.bf16.mxu0 %vm152_vm0, %v151_v0 }
   0x2   :  { %v146_v2 = vld [vmem:[%s203_s0] sm:$0xff]   ;;  %138 = vmatpush3.bf16.msra.mxu0 %v145_v1 }
   0x3   :  { %v133_v26 = vld [vmem:[%s204_s2] ss:$0 sm:$0xff] }
   0x4   :  { %v134_v28 = vld [vmem:[%s205_s3] ss:$0 sm:$0xff] }
   0x5   :  { %140 = vmatmul.mubr.msk.bf16.vlgmr.msra.gmra.mrb[0].mxu0 %vm33_vm1, %v146_v2 }
  0xd8   :  { %v71_v3 = vpop.f32.mrb[0].mxu0 }
  0xd9   :  { %v141_v4 = vpop.f32.mrb[1].mxu0  ;;  %v79_v5 = vsel %vm78_vm2, %v71_v3, 0.0 }
  0xda   :  { %80 = vadd.xlane.f32.xlu0 %v79_v5  ;;  %v74_v6 = vpop.f32.mrb[2].mxu0 }
  0xdb   :  { %v142_v7 = vpop.f32.mrb[3].mxu0  ;;  %v82_v8 = vsel %vm78_vm2, %v74_v6, 0.0 }
  0xde   :  { %83 = vadd.xlane.f32.xlu0 %v82_v8 }
 0x167   :  { %v81_v9 = vpop.xlane.xlu0 %80 }
 0x168   :  { %v86_v10 = vmul.f32 0.015625, %v81_v9 }
 0x16a   :  { %v88_v11 = vsub.f32 %v71_v3, %v86_v10 }
 0x16b   :  { %v84_v12 = vpop.xlane.xlu0 %83 }
 0x16c   :  { %v87_v13 = vmul.f32 0.015625, %v84_v12  ;;  %v90_v14 = vmul.f32 %v88_v11, %v88_v11 }
 0x16e   :  { %v89_v15 = vsub.f32 %v74_v6, %v87_v13  ;;  %v92_v16 = vsel %vm78_vm2, %v90_v14, 0.0 }
 0x16f   :  { %93 = vadd.xlane.f32.xlu1 %v92_v16 }
 0x170   :  { %v91_v17 = vmul.f32 %v89_v15, %v89_v15 }
 0x172   :  { %v95_v18 = vsel %vm78_vm2, %v91_v17, 0.0 }
 0x173   :  { %96 = vadd.xlane.f32.xlu1 %v95_v18 }
 0x1fc   :  { %v94_v19 = vpop.xlane.xlu1 %93 }
 0x1fd   :  { %v98_v20 = vmul.f32 0.015625, %v94_v19 }
 0x1ff   :  { %v100_v21 = vadd.f32 1e-05, %v98_v20 }
 0x200   :  { %v97_v22 = vpop.xlane.xlu1 %96 }
 0x201   :  { %147 = vrsqrt.f32 %v100_v21  ;;  %v99_v23 = vmul.f32 0.015625, %v97_v22 }
 0x203   :  { %v101_v24 = vadd.f32 1e-05, %v99_v23 }
 0x205   :  { %149 = vrsqrt.f32 %v101_v24 }
 0x20b   :  { %v148_v25 = vpop.eup %147 }
 0x20c   :  { %v104_v27 = vmul.f32 %v148_v25, %v88_v11 }
 0x20e   :  { %v113_v29 = vmul.f32 %v133_v26, %v104_v27 }
 0x20f   :  { %v150_v30 = vpop.eup %149 }
 0x210   :  { %v122_v31 = vadd.f32 %v134_v28, %v113_v29  ;;  %v105_v32 = vmul.f32 %v150_v30, %v89_v15 }
 0x212   :  { %124 = vst.msk [vmem:[%s206_s4] sm:$0xff] %vm78_vm2, %v122_v31  ;;  %v114_v33 = vmul.f32 %v133_v26, %v105_v32 }
 0x214   :  { %v123_v34 = vadd.f32 %v134_v28, %v114_v33 }
 0x216   :  { %125 = vst.msk [vmem:[%s206_s4 + $0x8] sm:$0xff] %vm78_vm2, %v123_v34 }

// kernel: sligru_rnnt_forward.5
= control target key start
LH: loop header
LB: loop body
LE: loop exit
PB: predicated region body
PF: predicated region fallthrough
CT: control target
= control target key end

     0   :  { %v158_v1 = vmov 0.0   ;;  %vm159_vm0 = vmmov 0   ;;  %s207_s0 = inlined_call_operand.vmem [shape: bf16[16,32], index: 0, kind: input, shape index: {}]   ;;  %s208_s1 = inlined_call_operand.vmem [shape: bf16[32,24], index: 1, kind: input, shape index: {}]   ;;  %s209_s2 = inlined_call_operand.vmem [shape: f32[1,24], index: 2, kind: input, shape index: {}]   ;;  %s210_s3 = inlined_call_operand.hbm [shape: f32[16,24], index: 3, kind: output, shape index: {}]  }
   0x1   :  { %v131_v0 = vld [vmem:[%s208_s1] sm:$0xff]   ;;  %118 = vmatprep.subr.bf16.mxu0 %v158_v1  ;;  %v132_v2 = vld [vmem:[%s208_s1 + $0x8] sm:$0xff]   ;;  %122 = vmatprep.mubr.msk.bf16.mxu0 %vm159_vm0, %v158_v1 }
   0x2   :  { %119 = vmatpush3.bf16.msra.mxu0 %v131_v0 }
   0x3   :  { %120 = vmatprep.subr.bf16.mxu0 %v158_v1 }
   0x4   :  { %8 = vsyncpa [#allocation3], 0  ;;  %v133_v3 = vld [vmem:[%s207_s0] sm:$0xff]   ;;  %vm46_vm1 = vcmask 261120   ;;  %s160_s20 = smov [#allocation2]   ;;  %vm91_vm2 = vcmask 195584  }
   0x5   :  { %v110_v4 = vld [vmem:[%s209_s2] ss:$0 sm:$0xff]  ;;  %s99_s21 = sshll.u32 %s160_s20, 4  ;;  %s100_s21 = int_to_ptr.vmem [resolvable:$true] %s99_s21 }
   0x6   :  { %121 = vmatpush3.bf16.msra.mxu0 %v132_v2  ;;  %s134_s0 = scalar_lea.vmem %s100_s21, 256  ;;  %p139_p1 = scmp.lt.s32.totalorder %s100_s21, %s100_s21 }
   0x7   :  { %p135_p0 = scmp.ne.s32.totalorder %s100_s21, %s134_s0  ;;  %p140_p2 = scmp.lt.s32.totalorder %s134_s0, %s134_s0 }
   0x9   :  { %123 = vmatmul.mubr.msk.bf16.vlgmr.msra.gmra.mrb[0].mxu0 %vm46_vm1, %v133_v3  ;;  %p141_p3 = por %p140_p2, %p139_p1 }
   0xb   :  { %p142_p4 = pnand %p141_p3, %p135_p0 }
  0xdc   :  { %v84_v5 = vpop.f32.mrb[0].mxu0 }
  0xdd   :  { %v85_v6 = vadd.f32 %v110_v4, %v84_v5  ;;  %v124_v7 = vpop.f32.mrb[1].mxu0 }
  0xde   :  { %v87_v8 = vpop.f32.mrb[2].mxu0 }
  0xdf   :  { %92 = vst.msk [vmem:[#allocation2] sm:$0xff] %vm91_vm2, %v85_v6  ;;  %v88_v9 = vadd.f32 %v110_v4, %v87_v8  ;;  %v125_v10 = vpop.f32.mrb[3].mxu0 }
  0xe1   :  { %93 = vst.msk [vmem:[#allocation2 + $0x8] sm:$0xff] %vm91_vm2, %v88_v9 }
  0xe2   :  { %145 = shalt.err (!%p142_p4)
}
  0xe3   :  { %s146_s22 = scalar_lea.hbm %s210_s3, 256 }
  0xe4   :  { %p147_p5 = scmp.ne.s32.totalorder %s210_s3, %s146_s22  ;;  %p150_p6 = scmp.lt.u32.totalorder %s146_s22, %s210_s3 }
  0xe6   :  { %p152_p7 = pnand %p150_p6, %p147_p5 }
  0xe8   :  { %155 = shalt.err (!%p152_p7)
}
  0xe9   :  { %s161_s27 = smov 128   ;;  %s162_s28 = smov 8  }
  0xea   :  { %105 = dma.vmem_to_hbm [thread:$0]  %s100_s21, 256, %s210_s3, [#allocation3], %s161_s27, %s161_s27, %s162_s28  }
  0xeb   :  { %156 = dma.done.wait [#allocation3], 256  }
  0xec   :  { %157 = vsyncadd [#allocation3], 4294967040 }
  0xed   :  { %109 = vsyncpa [#allocation3], 1 }

// kernel: sligru_rnnt_forward.4
= control target key start
LH: loop header
LB: loop body
LE: loop exit
PB: predicated region body
PF: predicated region fallthrough
CT: control target
= control target key end

     0   :  { %vm16_vm0 = vcmask 254976   ;;  %v1372_v0 = vmov 0.0   ;;  %vm1373_vm1 = vmmov 0   ;;  %vm38_vm2 = vcmask 261120   ;;  %s1375_s17 = smov 96   ;;  %s1813_s1 = inlined_call_operand.vmem [shape: bf16[32,64], index: 1, kind: input, shape index: {}]   ;;  %s1814_s0 = inlined_call_operand.vmem [shape: f32[2,8,64], index: 0, kind: input, shape index: {}]   ;;  %s1815_s2 = inlined_call_operand.vmem [shape: bf16[2,8,32], index: 2, kind: output, shape index: {}]  }
   0x1   :  { %1202 = vmatprep.subr.bf16.mxu0 %v1372_v0  ;;  %v1395_v1 = vld [vmem:[%s1813_s1] sm:$0xff]   ;;  %1206 = vmatprep.mubr.msk.bf16.mxu0 %vm1373_vm1, %v1372_v0  ;;  %17 = vst.msk [vmem:[#allocation2] sm:$0x3] %vm16_vm0, %v1372_v0  ;;  %v1408_v2 = vld [vmem:[%s1813_s1 + $0x8] sm:$0xff]   ;;  %s1374_s1 = smov 32   ;;  %vm82_vm3 = vcmask 517120  }
   0x2   :  { %1210 = vmatprep.subr.bf16.mxu1 %v1372_v0  ;;  %1214 = vmatprep.mubr.msk.bf16.mxu1 %vm1373_vm1, %v1372_v0  ;;  %v24_v24 = vld [vmem:[%s1814_s0 + $0x8] sm:$0x1]  ;;  %v23_v25 = vld [vmem:[%s1814_s0] sm:$0x1]  ;;  %vm174_vm6 = vcmask 1041409  }
   0x3   :  { %1203 = vmatpush3.bf16.msra.mxu0 %v1395_v1  ;;  %1211 = vmatpush3.bf16.msra.mxu1 %v1395_v1 }
   0x4   :  { %1204 = vmatprep.subr.bf16.mxu0 %v1372_v0  ;;  %1212 = vmatprep.subr.bf16.mxu1 %v1372_v0 }
   0x7   :  { %1205 = vmatpush3.bf16.msra.mxu0 %v1408_v2  ;;  %1213 = vmatpush3.bf16.msra.mxu1 %v1408_v2 }
   0x8   :  { %v22_v3 = vld [vmem:[#allocation2] sm:$0x3]  ;;  %1218 = vmatprep.subr.bf16.mxu0 %v1372_v0  ;;  %1226 = vmatprep.subr.bf16.mxu1 %v1372_v0 }
   0x9   :  { %v25_v4 = vpack.c.bf16 %v22_v3, %v22_v3  ;;  %v125_v5 = vrot.slane %v22_v3, 1 }
   0xb   :  { %1207 = vmatmul.mubr.msk.bf16.vlgmr.msra.gmra.mrb[0].mxu0 %vm38_vm2, %v25_v4  ;;  %128 = vrot.lane.b32.xlu1 %v125_v5, %s1374_s1 }
   0xc   :  { %1219 = vmatpush3.bf16.msra.mxu0 %v1395_v1  ;;  %1222 = vmatprep.mubr.msk.bf16.mxu0 %vm1373_vm1, %v1372_v0 }
   0xd   :  { %1220 = vmatprep.subr.bf16.mxu0 %v1372_v0 }
  0x10   :  { %1221 = vmatpush3.bf16.msra.mxu0 %v1408_v2 }
  0x11   :  { %1234 = vmatprep.subr.bf16.mxu0 %v1372_v0 }
  0x7d   :  { %v129_v40 = vpop.permute.xlu1 %128 }
  0xde   :  { %v76_v6 = vpop.f32.mrb[0].mxu0 }
  0xdf   :  { %v1208_v7 = vpop.f32.mrb[1].mxu0  ;;  %v83_v8 = vsel %vm82_vm3, %v76_v6, 0.0  ;;  %v88_v9 = vmul.f32 %v76_v6, %v76_v6 }
  0xe0   :  { %84 = vadd.xlane.f32.xlu0 %v83_v8  ;;  %v79_v10 = vpop.f32.mrb[2].mxu0 }
  0xe1   :  { %v1209_v11 = vpop.f32.mrb[3].mxu0  ;;  %v89_v12 = vsel %vm82_vm3, %v88_v9, 0.0 }
  0xe4   :  { %90 = vadd.xlane.f32.xlu0 %v89_v12 }
  0xfa   :  { %126 = vrot.lane.b32.xlu0 %v22_v3, %s1374_s1 }
 0x16d   :  { %v85_v13 = vpop.xlane.xlu0 %84 }
 0x16e   :  { %v87_v14 = vmul.f32 0.015625, %v85_v13 }
 0x170   :  { %v93_v16 = vmul.f32 %v87_v14, %v87_v14  ;;  %v96_v21 = vsub.f32 %v76_v6, %v87_v14 }
 0x171   :  { %v91_v15 = vpop.xlane.xlu0 %90 }
 0x172   :  { %v92_v17 = vmul.f32 0.015625, %v91_v15 }
 0x174   :  { %v94_v18 = vsub.f32 %v92_v17, %v93_v16  ;;  %v171_v17 = vld [vmem:[%s1814_s0 + $0x1] sm:$0x1] }
 0x175   :  { %v127_v46 = vpop.permute.xlu0 %126 }
 0x176   :  { %v95_v19 = vmax.f32 %v94_v18, 0.0 }
 0x178   :  { %v97_v20 = vadd.f32 1e-05, %v95_v19  ;;  %v172_v19 = vld [vmem:[%s1814_s0 + $0x9] sm:$0x1] }
 0x17a   :  { %1292 = vrsqrt.f32 %v97_v20 }
 0x184   :  { %v1293_v22 = vpop.eup %1292 }
 0x185   :  { %v99_v23 = vmul.f32 %v1293_v22, %v96_v21 }
 0x187   :  { %v101_v26 = vrot.slane %v99_v23, 1  ;;  %v104_v28 = vadd.f32 %v99_v23, %v23_v25 }
 0x189   :  { %v105_v27 = vadd.f32 %v101_v26, %v24_v24  ;;  %v120_v31 = vmul.f32 0.01, %v104_v28  ;;  %vm118_vm5 = vcmp.gt.f32.partialorder %v104_v28, 0.0  ;;  %v1123_v34 = vmul.f32 -1.442695, %v104_v28 }
 0x18b   :  { %vm119_vm4 = vcmp.gt.f32.partialorder %v105_v27, 0.0  ;;  %v121_v29 = vmul.f32 0.01, %v105_v27  ;;  %v122_v32 = vsel %vm118_vm5, %v104_v28, %v120_v31  ;;  %v1124_v33 = vmul.f32 -1.442695, %v105_v27 }
 0x18d   :  { %v123_v30 = vsel %vm119_vm4, %v105_v27, %v121_v29  ;;  %1294 = vpow2.f32 %v1124_v33 }
 0x18e   :  { %140 = vrot.lane.b32.xlu1 %v123_v30, %s1374_s1  ;;  %1296 = vpow2.f32 %v1123_v34 }
 0x192   :  { %138 = vrot.lane.b32.xlu1 %v122_v32, %s1374_s1 }
 0x197   :  { %v1295_v35 = vpop.eup %1294 }
 0x198   :  { %v113_v36 = vadd.f32 1.0, %v1295_v35  ;;  %v1297_v37 = vpop.eup %1296 }
 0x199   :  { %v112_v38 = vadd.f32 1.0, %v1297_v37 }
 0x19a   :  { %1298 = vrcp.f32 %v113_v36 }
 0x19b   :  { %1300 = vrcp.f32 %v112_v38 }
 0x1a4   :  { %v1299_v39 = vpop.eup %1298 }
 0x1a5   :  { %v135_v41 = vsub.f32 1.0, %v1299_v39  ;;  %v1301_v42 = vpop.eup %1300  ;;  %v133_v44 = vmul.f32 %v1299_v39, %v129_v40 }
 0x1a6   :  { %v134_v48 = vsub.f32 1.0, %v1301_v42  ;;  %v132_v50 = vmul.f32 %v1301_v42, %v127_v46 }
 0x200   :  { %v141_v43 = vpop.permute.xlu1 %140 }
 0x201   :  { %v145_v45 = vmul.f32 %v141_v43, %v135_v41 }
 0x203   :  { %v1436_v47 = vadd.f32 %v145_v45, %v133_v44 }
 0x204   :  { %v139_v49 = vpop.permute.xlu1 %138 }
 0x205   :  { %v1440_v51 = vpack.c.bf16 %v1436_v47, %v1436_v47  ;;  %v144_v52 = vmul.f32 %v139_v49, %v134_v48 }
 0x207   :  { %v153_v53 = vunpack.c.l.b16 %v1440_v51  ;;  %v1443_v54 = vadd.f32 %v144_v52, %v132_v50 }
 0x209   :  { %v1447_v55 = vpack.c.bf16 %v1443_v54, %v1443_v54  ;;  %v173_v56 = vrot.slane %v153_v53, 7 }
 0x20b   :  { %v152_v57 = vunpack.c.l.b16 %v1447_v55 }
 0x20d   :  { %v175_v58 = vsel %vm174_vm6, %v173_v56, %v152_v57 }
 0x20e   :  { %v176_v59 = vpack.c.b16 %v175_v58, %v175_v58 }
 0x210   :  { %177 = vrot.lane.b32.xlu1 %v176_v59, %s1375_s17 }
 0x282   :  { %v178_v60 = vpop.permute.xlu1 %177 }
 0x283   :  { %1215 = vmatmul.mubr.msk.bf16.vlgmr.msra.gmra.mrb[0].mxu1 %vm38_vm2, %v178_v60 }
 0x284   :  { %1227 = vmatpush3.bf16.msra.mxu1 %v1395_v1  ;;  %1230 = vmatprep.mubr.msk.bf16.mxu1 %vm1373_vm1, %v1372_v0 }
 0x285   :  { %1228 = vmatprep.subr.bf16.mxu1 %v1372_v0 }
 0x288   :  { %1229 = vmatpush3.bf16.msra.mxu1 %v1408_v2 }
 0x289   :  { %1242 = vmatprep.subr.bf16.mxu1 %v1372_v0 }
 0x356   :  { %v216_v61 = vpop.f32.mrb[0].mxu1 }
 0x357   :  { %v1216_v62 = vpop.f32.mrb[1].mxu1  ;;  %v222_v63 = vsel %vm82_vm3, %v216_v61, 0.0  ;;  %v226_v3 = vmul.f32 %v216_v61, %v216_v61 }
 0x358   :  { %223 = vadd.xlane.f32.xlu1 %v222_v63  ;;  %v219_v4 = vpop.f32.mrb[2].mxu1 }
 0x359   :  { %v1217_v5 = vpop.f32.mrb[3].mxu1  ;;  %v227_v6 = vsel %vm82_vm3, %v226_v3, 0.0 }
 0x35a   :  { %228 = vadd.xlane.f32.xlu0 %v227_v6 }
 0x3e5   :  { %v224_v7 = vpop.xlane.xlu1 %223 }
 0x3e6   :  { %v225_v8 = vmul.f32 0.015625, %v224_v7 }
 0x3e7   :  { %v229_v9 = vpop.xlane.xlu0 %228 }
 0x3e8   :  { %v231_v10 = vmul.f32 %v225_v8, %v225_v8  ;;  %v230_v11 = vmul.f32 0.015625, %v229_v9  ;;  %v234_v15 = vsub.f32 %v216_v61, %v225_v8 }
 0x3ea   :  { %v232_v12 = vsub.f32 %v230_v11, %v231_v10 }
 0x3ec   :  { %v233_v13 = vmax.f32 %v232_v12, 0.0 }
 0x3ee   :  { %v235_v14 = vadd.f32 1e-05, %v233_v13 }
 0x3f0   :  { %1302 = vrsqrt.f32 %v235_v14  ;;  %v306_v14 = vld [vmem:[%s1814_s0 + $0x2] sm:$0x1] }
 0x3fa   :  { %v1303_v16 = vpop.eup %1302 }
 0x3fb   :  { %v237_v18 = vmul.f32 %v1303_v16, %v234_v15  ;;  %v307_v16 = vld [vmem:[%s1814_s0 + $0xa] sm:$0x1] }
 0x3fd   :  { %v242_v20 = vadd.f32 %v237_v18, %v171_v17  ;;  %v239_v21 = vrot.slane %v237_v18, 1 }
 0x3ff   :  { %vm256_vm7 = vcmp.gt.f32.partialorder %v242_v20, 0.0  ;;  %v258_v22 = vmul.f32 0.01, %v242_v20  ;;  %v243_v23 = vadd.f32 %v239_v21, %v172_v19  ;;  %v1128_v27 = vmul.f32 -1.442695, %v242_v20 }
 0x401   :  { %v260_v24 = vsel %vm256_vm7, %v242_v20, %v258_v22  ;;  %vm257_vm8 = vcmp.gt.f32.partialorder %v243_v23, 0.0  ;;  %v259_v25 = vmul.f32 0.01, %v243_v23  ;;  %v1129_v28 = vmul.f32 -1.442695, %v243_v23 }
 0x402   :  { %268 = vrot.lane.b32.xlu0 %v260_v24, %s1374_s1  ;;  %1304 = vpow2.f32 %v1128_v27  ;;  %vm162_vm7 = vcmask 253952  }
 0x403   :  { %v261_v26 = vsel %vm257_vm8, %v243_v23, %v259_v25  ;;  %1306 = vpow2.f32 %v1129_v28  ;;  %vm163_vm8 = vsmask.f32 256 }
 0x404   :  { %270 = vrot.lane.b32.xlu1 %v261_v26, %s1374_s1 }
 0x40c   :  { %v1305_v29 = vpop.eup %1304 }
 0x40d   :  { %v1307_v30 = vpop.eup %1306  ;;  %v250_v31 = vadd.f32 1.0, %v1305_v29 }
 0x40e   :  { %v251_v32 = vadd.f32 1.0, %v1307_v30 }
 0x40f   :  { %1308 = vrcp.f32 %v250_v31 }
 0x410   :  { %1310 = vrcp.f32 %v251_v32 }
 0x419   :  { %v1309_v33 = vpop.eup %1308 }
 0x41a   :  { %v1311_v34 = vpop.eup %1310  ;;  %v264_v35 = vsub.f32 1.0, %v1309_v33  ;;  %v262_v37 = vmul.f32 %v1309_v33, %v1443_v54 }
 0x41b   :  { %v265_v39 = vsub.f32 1.0, %v1311_v34  ;;  %v263_v42 = vmul.f32 %v1311_v34, %v1436_v47 }
 0x474   :  { %v269_v36 = vpop.permute.xlu0 %268 }
 0x475   :  { %v274_v38 = vmul.f32 %v269_v36, %v264_v35 }
 0x476   :  { %v271_v40 = vpop.permute.xlu1 %270 }
 0x477   :  { %v1470_v41 = vadd.f32 %v274_v38, %v262_v37  ;;  %v275_v43 = vmul.f32 %v271_v40, %v265_v39 }
 0x479   :  { %v278_v44 = vpack.c.bf16 %v1470_v41, %v1470_v41  ;;  %v1475_v45 = vadd.f32 %v275_v43, %v263_v42 }
 0x47b   :  { %v279_v46 = vpack.c.bf16 %v1475_v45, %v1475_v45  ;;  %v287_v49 = vshll.u32 %v278_v44, 16  ;;  %v282_v52 = vunpack.c.l.b16 %v278_v44 }
 0x47d   :  { %v283_v48 = vunpack.c.l.b16 %v279_v46  ;;  %v290_v50 = vshll.u32 %v279_v46, 16 }
 0x47f   :  { %v308_v53 = vrot.slane %v283_v48, 7  ;;  %v1479_v54 = vpack.i.bf16 %v290_v50, %v287_v49 }
 0x481   :  { %v309_v56 = vsel %vm174_vm6, %v308_v53, %v282_v52 }
 0x482   :  { %v310_v57 = vpack.c.b16 %v309_v56, %v309_v56 }
 0x484   :  { %311 = vrot.lane.b32.xlu1 %v310_v57, %s1375_s17 }
 0x4f6   :  { %v312_v47 = vpop.permute.xlu1 %311 }
 0x4f7   :  { %1223 = vmatmul.mubr.msk.bf16.vlgmr.msra.gmra.mrb[4].mxu0 %vm38_vm2, %v312_v47 }
 0x4f8   :  { %1235 = vmatpush3.bf16.msra.mxu0 %v1395_v1  ;;  %1238 = vmatprep.mubr.msk.bf16.mxu0 %vm1373_vm1, %v1372_v0 }
 0x4f9   :  { %1236 = vmatprep.subr.bf16.mxu0 %v1372_v0 }
 0x4fc   :  { %1237 = vmatpush3.bf16.msra.mxu0 %v1408_v2 }
 0x4fd   :  { %1250 = vmatprep.subr.bf16.mxu0 %v1372_v0 }
 0x5ca   :  { %v350_v58 = vpop.f32.mrb[4].mxu0 }
 0x5cb   :  { %v1224_v59 = vpop.f32.mrb[5].mxu0  ;;  %v356_v60 = vsel %vm82_vm3, %v350_v58, 0.0  ;;  %v360_v61 = vmul.f32 %v350_v58, %v350_v58 }
 0x5cc   :  { %357 = vadd.xlane.f32.xlu1 %v356_v60  ;;  %v353_v62 = vpop.f32.mrb[6].mxu0 }
 0x5cd   :  { %v1225_v63 = vpop.f32.mrb[7].mxu0  ;;  %v361_v3 = vsel %vm82_vm3, %v360_v61, 0.0 }
 0x5ce   :  { %362 = vadd.xlane.f32.xlu0 %v361_v3 }
 0x659   :  { %v358_v4 = vpop.xlane.xlu1 %357 }
 0x65a   :  { %v359_v5 = vmul.f32 0.015625, %v358_v4 }
 0x65b   :  { %v363_v6 = vpop.xlane.xlu0 %362 }
 0x65c   :  { %v365_v7 = vmul.f32 %v359_v5, %v359_v5  ;;  %v364_v8 = vmul.f32 0.015625, %v363_v6  ;;  %v368_v12 = vsub.f32 %v350_v58, %v359_v5 }
 0x65e   :  { %v366_v9 = vsub.f32 %v364_v8, %v365_v7 }
 0x660   :  { %v367_v10 = vmax.f32 %v366_v9, 0.0  ;;  %v437_v9 = vld [vmem:[%s1814_s0 + $0x3] sm:$0x1] }
 0x662   :  { %v369_v11 = vadd.f32 1e-05, %v367_v10 }
 0x664   :  { %1312 = vrsqrt.f32 %v369_v11  ;;  %v438_v11 = vld [vmem:[%s1814_s0 + $0xb] sm:$0x1] }
 0x66e   :  { %v1313_v13 = vpop.eup %1312 }
 0x66f   :  { %v371_v15 = vmul.f32 %v1313_v13, %v368_v12 }
 0x671   :  { %v376_v17 = vadd.f32 %v371_v15, %v306_v14  ;;  %v373_v18 = vrot.slane %v371_v15, 1 }
 0x673   :  { %vm390_vm9 = vcmp.gt.f32.partialorder %v376_v17, 0.0  ;;  %v392_v19 = vmul.f32 0.01, %v376_v17  ;;  %v377_v20 = vadd.f32 %v373_v18, %v307_v16  ;;  %v1133_v24 = vmul.f32 -1.442695, %v376_v17 }
 0x675   :  { %v394_v21 = vsel %vm390_vm9, %v376_v17, %v392_v19  ;;  %vm391_vm10 = vcmp.gt.f32.partialorder %v377_v20, 0.0  ;;  %v393_v22 = vmul.f32 0.01, %v377_v20  ;;  %v1134_v25 = vmul.f32 -1.442695, %v377_v20  ;;  %vm1681_vm9 = vmand %vm162_vm7, %vm163_vm8 }
 0x676   :  { %402 = vrot.lane.b32.xlu0 %v394_v21, %s1374_s1  ;;  %1314 = vpow2.f32 %v1133_v24  ;;  %vm832_vm8 = vsmask.f32 7946 }
 0x677   :  { %v395_v23 = vsel %vm391_vm10, %v377_v20, %v393_v22  ;;  %1316 = vpow2.f32 %v1134_v25  ;;  %vm428_vm10 = vcmask 254977  }
 0x678   :  { %404 = vrot.lane.b32.xlu1 %v395_v23, %s1374_s1 }
 0x680   :  { %v1315_v26 = vpop.eup %1314 }
 0x681   :  { %v1317_v27 = vpop.eup %1316  ;;  %v384_v28 = vadd.f32 1.0, %v1315_v26 }
 0x682   :  { %v385_v29 = vadd.f32 1.0, %v1317_v27 }
 0x683   :  { %1318 = vrcp.f32 %v384_v28 }
 0x684   :  { %1320 = vrcp.f32 %v385_v29 }
 0x68d   :  { %v1319_v30 = vpop.eup %1318 }
 0x68e   :  { %v1321_v31 = vpop.eup %1320  ;;  %v398_v32 = vsub.f32 1.0, %v1319_v30  ;;  %v396_v34 = vmul.f32 %v1319_v30, %v1470_v41 }
 0x68f   :  { %v399_v36 = vsub.f32 1.0, %v1321_v31  ;;  %v397_v39 = vmul.f32 %v1321_v31, %v1475_v45 }
 0x6e8   :  { %v403_v33 = vpop.permute.xlu0 %402 }
 0x6e9   :  { %v408_v35 = vmul.f32 %v403_v33, %v398_v32 }
 0x6ea   :  { %v405_v37 = vpop.permute.xlu1 %404 }
 0x6eb   :  { %v1501_v38 = vadd.f32 %v408_v35, %v396_v34  ;;  %v409_v40 = vmul.f32 %v405_v37, %v399_v36 }
 0x6ed   :  { %v1504_v42 = vadd.f32 %v409_v40, %v397_v39  ;;  %v1508_v43 = vpack.c.bf16 %v1501_v38, %v1501_v38 }
 0x6ef   :  { %v1512_v44 = vpack.c.bf16 %v1504_v42, %v1504_v42  ;;  %v416_v46 = vunpack.c.l.b16 %v1508_v43 }
 0x6f1   :  { %v417_v41 = vunpack.c.l.b16 %v1512_v44 }
 0x6f3   :  { %v439_v48 = vrot.slane %v417_v41, 7 }
 0x6f5   :  { %v440_v49 = vsel %vm174_vm6, %v439_v48, %v416_v46 }
 0x6f6   :  { %v441_v50 = vpack.c.b16 %v440_v49, %v440_v49 }
 0x6f8   :  { %442 = vrot.lane.b32.xlu1 %v441_v50, %s1375_s17 }
 0x76a   :  { %v443_v45 = vpop.permute.xlu1 %442 }
 0x76b   :  { %1231 = vmatmul.mubr.msk.bf16.vlgmr.msra.gmra.mrb[4].mxu1 %vm38_vm2, %v443_v45 }
 0x76c   :  { %1243 = vmatpush3.bf16.msra.mxu1 %v1395_v1  ;;  %1246 = vmatprep.mubr.msk.bf16.mxu1 %vm1373_vm1, %v1372_v0 }
 0x76d   :  { %1244 = vmatprep.subr.bf16.mxu1 %v1372_v0 }
 0x770   :  { %1245 = vmatpush3.bf16.msra.mxu1 %v1408_v2 }
 0x771   :  { %1258 = vmatprep.subr.bf16.mxu1 %v1372_v0 }
 0x83e   :  { %v481_v52 = vpop.f32.mrb[4].mxu1 }
 0x83f   :  { %v1232_v53 = vpop.f32.mrb[5].mxu1  ;;  %v487_v56 = vsel %vm82_vm3, %v481_v52, 0.0  ;;  %v491_v57 = vmul.f32 %v481_v52, %v481_v52 }
 0x840   :  { %488 = vadd.xlane.f32.xlu1 %v487_v56  ;;  %v484_v47 = vpop.f32.mrb[6].mxu1 }
 0x841   :  { %v1233_v58 = vpop.f32.mrb[7].mxu1  ;;  %v492_v59 = vsel %vm82_vm3, %v491_v57, 0.0 }
 0x842   :  { %493 = vadd.xlane.f32.xlu0 %v492_v59 }
 0x8cd   :  { %v489_v60 = vpop.xlane.xlu1 %488 }
 0x8ce   :  { %v490_v61 = vmul.f32 0.015625, %v489_v60 }
 0x8cf   :  { %v494_v62 = vpop.xlane.xlu0 %493 }
 0x8d0   :  { %v496_v63 = vmul.f32 %v490_v61, %v490_v61  ;;  %v495_v3 = vmul.f32 0.015625, %v494_v62  ;;  %v499_v7 = vsub.f32 %v481_v52, %v490_v61 }
 0x8d2   :  { %v497_v4 = vsub.f32 %v495_v3, %v496_v63 }
 0x8d4   :  { %v498_v5 = vmax.f32 %v497_v4, 0.0 }
 0x8d6   :  { %v500_v6 = vadd.f32 1e-05, %v498_v5 }
 0x8d8   :  { %1322 = vrsqrt.f32 %v500_v6 }
 0x8e2   :  { %v1323_v8 = vpop.eup %1322 }
 0x8e3   :  { %v502_v10 = vmul.f32 %v1323_v8, %v499_v7 }
 0x8e5   :  { %v507_v12 = vadd.f32 %v502_v10, %v437_v9  ;;  %v504_v13 = vrot.slane %v502_v10, 1 }
 0x8e7   :  { %vm521_vm11 = vcmp.gt.f32.partialorder %v507_v12, 0.0  ;;  %v523_v14 = vmul.f32 0.01, %v507_v12  ;;  %v508_v15 = vadd.f32 %v504_v13, %v438_v11  ;;  %v1138_v19 = vmul.f32 -1.442695, %v507_v12 }
 0x8e8   :  { %v573_v11 = vld [vmem:[%s1814_s0 + $0x4] sm:$0x1]  ;;  %v574_v13 = vld [vmem:[%s1814_s0 + $0xc] sm:$0x1] }
 0x8e9   :  { %v525_v16 = vsel %vm521_vm11, %v507_v12, %v523_v14  ;;  %vm522_vm12 = vcmp.gt.f32.partialorder %v508_v15, 0.0  ;;  %v524_v17 = vmul.f32 0.01, %v508_v15  ;;  %v1139_v20 = vmul.f32 -1.442695, %v508_v15 }
 0x8ea   :  { %533 = vrot.lane.b32.xlu0 %v525_v16, %s1374_s1  ;;  %1324 = vpow2.f32 %v1138_v19  ;;  %vm429_vm11 = vsmask.f32 1280 }
 0x8eb   :  { %v526_v18 = vsel %vm522_vm12, %v508_v15, %v524_v17  ;;  %1326 = vpow2.f32 %v1139_v20  ;;  %vm1698_vm12 = vmand %vm428_vm10, %vm429_vm11 }
 0x8ec   :  { %535 = vrot.lane.b32.xlu1 %v526_v18, %s1374_s1 }
 0x8f4   :  { %v1325_v21 = vpop.eup %1324 }
 0x8f5   :  { %v1327_v22 = vpop.eup %1326  ;;  %v515_v23 = vadd.f32 1.0, %v1325_v21 }
 0x8f6   :  { %v516_v24 = vadd.f32 1.0, %v1327_v22 }
 0x8f7   :  { %1328 = vrcp.f32 %v515_v23 }
 0x8f8   :  { %1330 = vrcp.f32 %v516_v24 }
 0x901   :  { %v1329_v25 = vpop.eup %1328 }
 0x902   :  { %v1331_v26 = vpop.eup %1330  ;;  %v529_v27 = vsub.f32 1.0, %v1329_v25  ;;  %v527_v29 = vmul.f32 %v1329_v25, %v1501_v38 }
 0x903   :  { %v530_v31 = vsub.f32 1.0, %v1331_v26  ;;  %v528_v34 = vmul.f32 %v1331_v26, %v1504_v42 }
 0x95c   :  { %v534_v28 = vpop.permute.xlu0 %533 }
 0x95d   :  { %v539_v30 = vmul.f32 %v534_v28, %v529_v27 }
 0x95e   :  { %v536_v32 = vpop.permute.xlu1 %535 }
 0x95f   :  { %v1536_v33 = vadd.f32 %v539_v30, %v527_v29  ;;  %v540_v35 = vmul.f32 %v536_v32, %v530_v31 }
 0x961   :  { %v543_v36 = vpack.c.bf16 %v1536_v33, %v1536_v33  ;;  %v1541_v37 = vadd.f32 %v540_v35, %v528_v34 }
 0x963   :  { %v544_v39 = vpack.c.bf16 %v1541_v37, %v1541_v37  ;;  %v552_v40 = vshll.u32 %v543_v36, 16  ;;  %v547_v38 = vunpack.c.l.b16 %v543_v36 }
 0x965   :  { %v548_v41 = vunpack.c.l.b16 %v544_v39  ;;  %v556_v46 = vshll.u32 %v544_v39, 16  ;;  %v1545_v49 = vrot.slane %v552_v40, 7 }
 0x967   :  { %v575_v48 = vrot.slane %v548_v41, 7  ;;  %v1547_v50 = vrot.slane %v556_v46, 7 }
 0x969   :  { %v576_v42 = vsel %vm174_vm6, %v575_v48, %v547_v38  ;;  %v1275_v45 = vpack.i.bf16 %v1547_v50, %v1545_v49 }
 0x96a   :  { %v577_v52 = vpack.c.b16 %v576_v42, %v576_v42 }
 0x96c   :  { %578 = vrot.lane.b32.xlu1 %v577_v52, %s1375_s17 }
 0x9de   :  { %v579_v53 = vpop.permute.xlu1 %578 }
 0x9df   :  { %1239 = vmatmul.mubr.msk.bf16.vlgmr.msra.gmra.mrb[8].mxu0 %vm38_vm2, %v579_v53 }
 0x9e0   :  { %1251 = vmatpush3.bf16.msra.mxu0 %v1395_v1  ;;  %1254 = vmatprep.mubr.msk.bf16.mxu0 %vm1373_vm1, %v1372_v0 }
 0x9e1   :  { %1252 = vmatprep.subr.bf16.mxu0 %v1372_v0 }
 0x9e4   :  { %1253 = vmatpush3.bf16.msra.mxu0 %v1408_v2 }
 0xab2   :  { %v617_v56 = vpop.f32.mrb[8].mxu0 }
 0xab3   :  { %v1240_v57 = vpop.f32.mrb[9].mxu0  ;;  %v623_v47 = vsel %vm82_vm3, %v617_v56, 0.0  ;;  %v627_v58 = vmul.f32 %v617_v56, %v617_v56 }
 0xab4   :  { %624 = vadd.xlane.f32.xlu1 %v623_v47  ;;  %v620_v59 = vpop.f32.mrb[10].mxu0 }
 0xab5   :  { %v1241_v60 = vpop.f32.mrb[11].mxu0  ;;  %v628_v61 = vsel %vm82_vm3, %v627_v58, 0.0 }
 0xab6   :  { %629 = vadd.xlane.f32.xlu0 %v628_v61 }
 0xb41   :  { %v625_v62 = vpop.xlane.xlu1 %624 }
 0xb42   :  { %v626_v63 = vmul.f32 0.015625, %v625_v62 }
 0xb43   :  { %v630_v3 = vpop.xlane.xlu0 %629 }
 0xb44   :  { %v632_v4 = vmul.f32 %v626_v63, %v626_v63  ;;  %v631_v5 = vmul.f32 0.015625, %v630_v3  ;;  %v635_v9 = vsub.f32 %v617_v56, %v626_v63 }
 0xb46   :  { %v633_v6 = vsub.f32 %v631_v5, %v632_v4 }
 0xb48   :  { %v634_v7 = vmax.f32 %v633_v6, 0.0 }
 0xb4a   :  { %v636_v8 = vadd.f32 1e-05, %v634_v7 }
 0xb4c   :  { %1332 = vrsqrt.f32 %v636_v8  ;;  %v704_v8 = vld [vmem:[%s1814_s0 + $0x5] sm:$0x1] }
 0xb56   :  { %v1333_v10 = vpop.eup %1332 }
 0xb57   :  { %v638_v12 = vmul.f32 %v1333_v10, %v635_v9  ;;  %v705_v10 = vld [vmem:[%s1814_s0 + $0xd] sm:$0x1] }
 0xb59   :  { %v643_v14 = vadd.f32 %v638_v12, %v573_v11  ;;  %v640_v15 = vrot.slane %v638_v12, 1 }
 0xb5b   :  { %vm657_vm13 = vcmp.gt.f32.partialorder %v643_v14, 0.0  ;;  %v659_v16 = vmul.f32 0.01, %v643_v14  ;;  %v644_v17 = vadd.f32 %v640_v15, %v574_v13  ;;  %v1143_v21 = vmul.f32 -1.442695, %v643_v14 }
 0xb5d   :  { %v661_v18 = vsel %vm657_vm13, %v643_v14, %v659_v16  ;;  %vm658_vm14 = vcmp.gt.f32.partialorder %v644_v17, 0.0  ;;  %v660_v19 = vmul.f32 0.01, %v644_v17  ;;  %v1144_v22 = vmul.f32 -1.442695, %v644_v17 }
 0xb5e   :  { %669 = vrot.lane.b32.xlu1 %v661_v18, %s1374_s1  ;;  %1334 = vpow2.f32 %v1143_v21  ;;  %vm695_vm13 = vcmask 256002  }
 0xb5f   :  { %v662_v20 = vsel %vm658_vm14, %v644_v17, %v660_v19  ;;  %1336 = vpow2.f32 %v1144_v22  ;;  %vm696_vm14 = vsmask.f32 2304 }
 0xb60   :  { %671 = vrot.lane.b32.xlu0 %v662_v20, %s1374_s1 }
 0xb68   :  { %v1335_v23 = vpop.eup %1334 }
 0xb69   :  { %v1337_v24 = vpop.eup %1336  ;;  %v651_v25 = vadd.f32 1.0, %v1335_v23 }
 0xb6a   :  { %v652_v26 = vadd.f32 1.0, %v1337_v24 }
 0xb6b   :  { %1338 = vrcp.f32 %v651_v25 }
 0xb6c   :  { %1340 = vrcp.f32 %v652_v26 }
 0xb75   :  { %v1339_v27 = vpop.eup %1338 }
 0xb76   :  { %v1341_v28 = vpop.eup %1340  ;;  %v665_v29 = vsub.f32 1.0, %v1339_v27  ;;  %v663_v31 = vmul.f32 %v1339_v27, %v1536_v33 }
 0xb77   :  { %v666_v34 = vsub.f32 1.0, %v1341_v28  ;;  %v664_v39 = vmul.f32 %v1341_v28, %v1541_v37 }
 0xbd0   :  { %v670_v30 = vpop.permute.xlu1 %669 }
 0xbd1   :  { %v675_v32 = vmul.f32 %v670_v30, %v665_v29 }
 0xbd2   :  { %v672_v35 = vpop.permute.xlu0 %671 }
 0xbd3   :  { %v1570_v36 = vadd.f32 %v675_v32, %v663_v31  ;;  %v676_v40 = vmul.f32 %v672_v35, %v666_v34 }
 0xbd5   :  { %v1573_v41 = vadd.f32 %v676_v40, %v664_v39  ;;  %v1577_v46 = vpack.c.bf16 %v1570_v36, %v1570_v36 }
 0xbd7   :  { %v1581_v38 = vpack.c.bf16 %v1573_v41, %v1573_v41  ;;  %v683_v48 = vunpack.c.l.b16 %v1577_v46 }
 0xbd9   :  { %v684_v33 = vunpack.c.l.b16 %v1581_v38 }
 0xbdb   :  { %v706_v42 = vrot.slane %v684_v33, 7 }
 0xbdd   :  { %v707_v52 = vsel %vm174_vm6, %v706_v42, %v683_v48 }
 0xbde   :  { %v708_v53 = vpack.c.b16 %v707_v52, %v707_v52 }
 0xbe0   :  { %709 = vrot.lane.b32.xlu1 %v708_v53, %s1375_s17 }
 0xc52   :  { %v710_v37 = vpop.permute.xlu1 %709 }
 0xc53   :  { %1247 = vmatmul.mubr.msk.bf16.vlgmr.msra.gmra.mrb[8].mxu1 %vm38_vm2, %v710_v37 }
 0xc54   :  { %1259 = vmatpush3.bf16.msra.mxu1 %v1395_v1  ;;  %1262 = vmatprep.mubr.msk.bf16.mxu1 %vm1373_vm1, %v1372_v0 }
 0xc55   :  { %1260 = vmatprep.subr.bf16.mxu1 %v1372_v0 }
 0xc58   :  { %1261 = vmatpush3.bf16.msra.mxu1 %v1408_v2 }
 0xd26   :  { %v748_v56 = vpop.f32.mrb[8].mxu1 }
 0xd27   :  { %v1248_v57 = vpop.f32.mrb[9].mxu1  ;;  %v754_v47 = vsel %vm82_vm3, %v748_v56, 0.0  ;;  %v758_v58 = vmul.f32 %v748_v56, %v748_v56 }
 0xd28   :  { %755 = vadd.xlane.f32.xlu0 %v754_v47  ;;  %v751_v59 = vpop.f32.mrb[10].mxu1 }
 0xd29   :  { %v1249_v60 = vpop.f32.mrb[11].mxu1  ;;  %v759_v61 = vsel %vm82_vm3, %v758_v58, 0.0 }
 0xd2a   :  { %760 = vadd.xlane.f32.xlu1 %v759_v61 }
 0xdb5   :  { %v756_v62 = vpop.xlane.xlu0 %755 }
 0xdb6   :  { %v757_v1 = vmul.f32 0.015625, %v756_v62 }
 0xdb7   :  { %v761_v63 = vpop.xlane.xlu1 %760 }
 0xdb8   :  { %v763_v3 = vmul.f32 %v757_v1, %v757_v1  ;;  %v762_v4 = vmul.f32 0.015625, %v761_v63  ;;  %v766_v2 = vsub.f32 %v748_v56, %v757_v1 }
 0xdba   :  { %v764_v5 = vsub.f32 %v762_v4, %v763_v3 }
 0xdbc   :  { %v765_v0 = vmax.f32 %v764_v5, 0.0 }
 0xdbe   :  { %v767_v6 = vadd.f32 1e-05, %v765_v0 }
 0xdc0   :  { %1342 = vrsqrt.f32 %v767_v6 }
 0xdca   :  { %v1343_v7 = vpop.eup %1342 }
 0xdcb   :  { %v769_v9 = vmul.f32 %v1343_v7, %v766_v2 }
 0xdcd   :  { %v774_v11 = vadd.f32 %v769_v9, %v704_v8  ;;  %v771_v12 = vrot.slane %v769_v9, 1 }
 0xdcf   :  { %vm788_vm15 = vcmp.gt.f32.partialorder %v774_v11, 0.0  ;;  %v790_v13 = vmul.f32 0.01, %v774_v11  ;;  %v775_v14 = vadd.f32 %v771_v12, %v705_v10  ;;  %v1148_v18 = vmul.f32 -1.442695, %v774_v11 }
 0xdd0   :  { %v840_v12 = vld [vmem:[%s1814_s0 + $0x6] sm:$0x1] }
 0xdd1   :  { %v792_v15 = vsel %vm788_vm15, %v774_v11, %v790_v13  ;;  %vm789_vm1 = vcmp.gt.f32.partialorder %v775_v14, 0.0  ;;  %v791_v16 = vmul.f32 0.01, %v775_v14  ;;  %v1149_v19 = vmul.f32 -1.442695, %v775_v14  ;;  %vm1721_vm15 = vmand %vm695_vm13, %vm696_vm14 }
 0xdd2   :  { %800 = vrot.lane.b32.xlu1 %v792_v15, %s1374_s1  ;;  %1344 = vpow2.f32 %v1148_v18 }
 0xdd3   :  { %v793_v17 = vsel %vm789_vm1, %v775_v14, %v791_v16  ;;  %1346 = vpow2.f32 %v1149_v19  ;;  %v841_v14 = vld [vmem:[%s1814_s0 + $0xe] sm:$0x1]  ;;  %vm962_vm1 = vcmask 257027  }
 0xdd4   :  { %802 = vrot.lane.b32.xlu0 %v793_v17, %s1374_s1 }
 0xddc   :  { %v1345_v20 = vpop.eup %1344 }
 0xddd   :  { %v1347_v21 = vpop.eup %1346  ;;  %v782_v22 = vadd.f32 1.0, %v1345_v20 }
 0xdde   :  { %v783_v23 = vadd.f32 1.0, %v1347_v21 }
 0xddf   :  { %1348 = vrcp.f32 %v782_v22 }
 0xde0   :  { %1350 = vrcp.f32 %v783_v23 }
 0xde9   :  { %v1349_v24 = vpop.eup %1348 }
 0xdea   :  { %v1351_v25 = vpop.eup %1350  ;;  %v796_v26 = vsub.f32 1.0, %v1349_v24  ;;  %v794_v28 = vmul.f32 %v1349_v24, %v1570_v36 }
 0xdeb   :  { %v797_v30 = vsub.f32 1.0, %v1351_v25  ;;  %v795_v34 = vmul.f32 %v1351_v25, %v1573_v41 }
 0xe44   :  { %v801_v27 = vpop.permute.xlu1 %800 }
 0xe45   :  { %v806_v29 = vmul.f32 %v801_v27, %v796_v26 }
 0xe46   :  { %v803_v31 = vpop.permute.xlu0 %802 }
 0xe47   :  { %v1604_v32 = vadd.f32 %v806_v29, %v794_v28  ;;  %v807_v35 = vmul.f32 %v803_v31, %v797_v30 }
 0xe49   :  { %v810_v39 = vpack.c.bf16 %v1604_v32, %v1604_v32  ;;  %v1609_v40 = vadd.f32 %v807_v35, %v795_v34 }
 0xe4b   :  { %v811_v33 = vpack.c.bf16 %v1609_v40, %v1609_v40  ;;  %v819_v48 = vshll.u32 %v810_v39, 16  ;;  %v814_v36 = vunpack.c.l.b16 %v810_v39 }
 0xe4d   :  { %v815_v42 = vunpack.c.l.b16 %v811_v33  ;;  %v823_v52 = vshll.u32 %v811_v33, 16  ;;  %v1613_v37 = vrot.slane %v819_v48, 6 }
 0xe4f   :  { %v842_v53 = vrot.slane %v815_v42, 7  ;;  %v1615_v56 = vrot.slane %v823_v52, 6 }
 0xe51   :  { %v843_v41 = vsel %vm174_vm6, %v842_v53, %v814_v36  ;;  %v1280_v57 = vpack.i.bf16 %v1615_v56, %v1613_v37 }
 0xe52   :  { %v844_v47 = vpack.c.b16 %v843_v41, %v843_v41 }
 0xe54   :  { %845 = vrot.lane.b32.xlu0 %v844_v47, %s1375_s17 }
 0xec6   :  { %v846_v58 = vpop.permute.xlu0 %845 }
 0xec7   :  { %1255 = vmatmul.mubr.msk.bf16.vlgmr.msra.gmra.mrb[12].mxu0 %vm38_vm2, %v846_v58 }
 0xf9a   :  { %v884_v59 = vpop.f32.mrb[12].mxu0 }
 0xf9b   :  { %v1256_v60 = vpop.f32.mrb[13].mxu0  ;;  %v890_v61 = vsel %vm82_vm3, %v884_v59, 0.0  ;;  %v894_v62 = vmul.f32 %v884_v59, %v884_v59 }
 0xf9c   :  { %891 = vadd.xlane.f32.xlu1 %v890_v61  ;;  %v887_v1 = vpop.f32.mrb[14].mxu0 }
 0xf9d   :  { %v1257_v63 = vpop.f32.mrb[15].mxu0  ;;  %v895_v3 = vsel %vm82_vm3, %v894_v62, 0.0 }
 0xf9e   :  { %896 = vadd.xlane.f32.xlu0 %v895_v3 }
0x1029   :  { %v892_v4 = vpop.xlane.xlu1 %891 }
0x102a   :  { %v893_v5 = vmul.f32 0.015625, %v892_v4 }
0x102b   :  { %v897_v0 = vpop.xlane.xlu0 %896 }
0x102c   :  { %v899_v6 = vmul.f32 %v893_v5, %v893_v5  ;;  %v898_v2 = vmul.f32 0.015625, %v897_v0  ;;  %v902_v10 = vsub.f32 %v884_v59, %v893_v5 }
0x102e   :  { %v900_v7 = vsub.f32 %v898_v2, %v899_v6 }
0x1030   :  { %v901_v8 = vmax.f32 %v900_v7, 0.0 }
0x1032   :  { %v903_v9 = vadd.f32 1e-05, %v901_v8 }
0x1034   :  { %1352 = vrsqrt.f32 %v903_v9 }
0x103e   :  { %v1353_v11 = vpop.eup %1352 }
0x103f   :  { %v905_v13 = vmul.f32 %v1353_v11, %v902_v10 }
0x1041   :  { %v910_v15 = vadd.f32 %v905_v13, %v840_v12  ;;  %v907_v16 = vrot.slane %v905_v13, 1 }
0x1043   :  { %vm924_vm4 = vcmp.gt.f32.partialorder %v910_v15, 0.0  ;;  %v926_v17 = vmul.f32 0.01, %v910_v15  ;;  %v911_v18 = vadd.f32 %v907_v16, %v841_v14  ;;  %v1153_v22 = vmul.f32 -1.442695, %v910_v15 }
0x1044   :  { %v971_v14 = vld [vmem:[%s1814_s0 + $0x7] sm:$0x1]  ;;  %v972_v16 = vld [vmem:[%s1814_s0 + $0xf] sm:$0x1] }
0x1045   :  { %v928_v19 = vsel %vm924_vm4, %v910_v15, %v926_v17  ;;  %vm925_vm5 = vcmp.gt.f32.partialorder %v911_v18, 0.0  ;;  %v927_v20 = vmul.f32 0.01, %v911_v18  ;;  %v1154_v23 = vmul.f32 -1.442695, %v911_v18 }
0x1046   :  { %936 = vrot.lane.b32.xlu1 %v928_v19, %s1374_s1  ;;  %1354 = vpow2.f32 %v1153_v22 }
0x1047   :  { %v929_v21 = vsel %vm925_vm5, %v911_v18, %v927_v20  ;;  %1356 = vpow2.f32 %v1154_v23  ;;  %vm298_vm5 = vsmask.f32 7938 }
0x1048   :  { %938 = vrot.lane.b32.xlu0 %v929_v21, %s1374_s1 }
0x1050   :  { %v1355_v24 = vpop.eup %1354 }
0x1051   :  { %v1357_v25 = vpop.eup %1356  ;;  %v918_v26 = vadd.f32 1.0, %v1355_v24  ;;  %v420_v24 = vrot.slane %v1508_v43, 7 }
0x1052   :  { %v919_v27 = vadd.f32 1.0, %v1357_v25  ;;  %v421_v25 = vrot.slane %v1512_v44, 7 }
0x1053   :  { %1358 = vrcp.f32 %v918_v26  ;;  %v687_v26 = vrot.slane %v1577_v46, 6 }
0x1054   :  { %1360 = vrcp.f32 %v919_v27  ;;  %v688_v27 = vrot.slane %v1581_v38, 6 }
0x105d   :  { %v1359_v28 = vpop.eup %1358 }
0x105e   :  { %v1361_v29 = vpop.eup %1360  ;;  %v932_v30 = vsub.f32 1.0, %v1359_v28  ;;  %v930_v34 = vmul.f32 %v1359_v28, %v1604_v32 }
0x105f   :  { %v933_v39 = vsub.f32 1.0, %v1361_v29  ;;  %v931_v42 = vmul.f32 %v1361_v29, %v1609_v40 }
0x10b8   :  { %v937_v31 = vpop.permute.xlu1 %936 }
0x10b9   :  { %v942_v35 = vmul.f32 %v937_v31, %v932_v30 }
0x10ba   :  { %v939_v33 = vpop.permute.xlu0 %938 }
0x10bb   :  { %v1633_v48 = vadd.f32 %v942_v35, %v930_v34  ;;  %v943_v52 = vmul.f32 %v939_v33, %v933_v39  ;;  %v165_v34 = vld [vmem:[%s1815_s2] sm:$0x1] }
0x10bd   :  { %v1636_v36 = vadd.f32 %v943_v52, %v931_v42  ;;  %v946_v53 = vpack.c.bf16 %v1633_v48, %v1633_v48 }
0x10bf   :  { %v947_v41 = vpack.c.bf16 %v1636_v36, %v1636_v36  ;;  %v950_v58 = vunpack.c.l.b16 %v946_v53 }
0x10c1   :  { %v951_v47 = vunpack.c.l.b16 %v947_v41 }
0x10c3   :  { %v973_v59 = vrot.slane %v951_v47, 7 }
0x10c5   :  { %v974_v32 = vsel %vm174_vm6, %v973_v59, %v950_v58  ;;  %v431_v58 = vld [vmem:[%s1815_s2] sm:$0x2] }
0x10c6   :  { %v975_v60 = vpack.c.b16 %v974_v32, %v974_v32 }
0x10c8   :  { %976 = vrot.lane.b32.xlu1 %v975_v60, %s1375_s17 }
0x113a   :  { %v977_v61 = vpop.permute.xlu1 %976 }
0x113b   :  { %1263 = vmatmul.mubr.msk.bf16.vlgmr.msra.gmra.mrb[12].mxu1 %vm38_vm2, %v977_v61 }
0x120e   :  { %v1015_v40 = vpop.f32.mrb[12].mxu1 }
0x120f   :  { %v1264_v62 = vpop.f32.mrb[13].mxu1  ;;  %v1021_v1 = vsel %vm82_vm3, %v1015_v40, 0.0  ;;  %v1025_v63 = vmul.f32 %v1015_v40, %v1015_v40 }
0x1210   :  { %1022 = vadd.xlane.f32.xlu0 %v1021_v1  ;;  %v1018_v3 = vpop.f32.mrb[14].mxu1  ;;  %v434_v62 = vld [vmem:[%s1815_s2 + $0x4] sm:$0x2] }
0x1211   :  { %v1265_v4 = vpop.f32.mrb[15].mxu1  ;;  %v1026_v5 = vsel %vm82_vm3, %v1025_v63, 0.0 }
0x1212   :  { %1027 = vadd.xlane.f32.xlu1 %v1026_v5 }
0x129d   :  { %v1023_v0 = vpop.xlane.xlu0 %1022 }
0x129e   :  { %v1024_v6 = vmul.f32 0.015625, %v1023_v0  ;;  %v698_v0 = vld [vmem:[%s1815_s2] sm:$0x4] }
0x129f   :  { %v1028_v2 = vpop.xlane.xlu1 %1027 }
0x12a0   :  { %v1030_v7 = vmul.f32 %v1024_v6, %v1024_v6  ;;  %v1029_v8 = vmul.f32 0.015625, %v1028_v2  ;;  %v1033_v12 = vsub.f32 %v1015_v40, %v1024_v6 }
0x12a2   :  { %v1031_v9 = vsub.f32 %v1029_v8, %v1030_v7 }
0x12a4   :  { %v1032_v10 = vmax.f32 %v1031_v9, 0.0  ;;  %v701_v9 = vld [vmem:[%s1815_s2 + $0x4] sm:$0x4] }
0x12a6   :  { %v1034_v11 = vadd.f32 1e-05, %v1032_v10 }
0x12a8   :  { %1362 = vrsqrt.f32 %v1034_v11 }
0x12b2   :  { %v1363_v13 = vpop.eup %1362 }
0x12b3   :  { %v1036_v15 = vmul.f32 %v1363_v13, %v1033_v12  ;;  %v965_v13 = vld [vmem:[%s1815_s2] sm:$0x8] }
0x12b5   :  { %v1041_v17 = vadd.f32 %v1036_v15, %v971_v14  ;;  %v1038_v18 = vrot.slane %v1036_v15, 1 }
0x12b7   :  { %vm1055_vm2 = vcmp.gt.f32.partialorder %v1041_v17, 0.0  ;;  %v1057_v19 = vmul.f32 0.01, %v1041_v17  ;;  %v1042_v20 = vadd.f32 %v1038_v18, %v972_v16  ;;  %v1158_v43 = vmul.f32 -1.442695, %v1041_v17 }
0x12b8   :  { %v968_v16 = vld [vmem:[%s1815_s2 + $0x4] sm:$0x8] }
0x12b9   :  { %v1059_v21 = vsel %vm1055_vm2, %v1041_v17, %v1057_v19  ;;  %vm1056_vm3 = vcmp.gt.f32.partialorder %v1042_v20, 0.0  ;;  %v1058_v22 = vmul.f32 0.01, %v1042_v20  ;;  %v1159_v44 = vmul.f32 -1.442695, %v1042_v20 }
0x12ba   :  { %1067 = vrot.lane.b32.xlu0 %v1059_v21, %s1374_s1  ;;  %1364 = vpow2.f32 %v1158_v43  ;;  %vm565_vm2 = vsmask.f32 7942 }
0x12bb   :  { %v1060_v23 = vsel %vm1056_vm3, %v1042_v20, %v1058_v22  ;;  %1366 = vpow2.f32 %v1159_v44  ;;  %vm299_vm3 = vmand %vm162_vm7, %vm298_vm5 }
0x12bc   :  { %1069 = vrot.lane.b32.xlu1 %v1060_v23, %s1374_s1  ;;  %vm833_vm7 = vmand %vm695_vm13, %vm832_vm8 }
0x12be   :  { %156 = vrot.lane.b32.xlu0 %v1447_v55, %s1375_s17  ;;  %v954_v55 = vrot.slane %v946_v53, 5 }
0x12c0   :  { %158 = vrot.lane.b32.xlu1 %v1440_v51, %s1375_s17  ;;  %v955_v51 = vrot.slane %v947_v41, 5 }
0x12c2   :  { %422 = vrot.lane.b32.xlu0 %v420_v24, %s1375_s17 }
0x12c4   :  { %424 = vrot.lane.b32.xlu1 %v421_v25, %s1375_s17  ;;  %v1365_v46 = vpop.eup %1364 }
0x12c5   :  { %v1367_v38 = vpop.eup %1366  ;;  %v1049_v28 = vadd.f32 1.0, %v1365_v46 }
0x12c6   :  { %689 = vrot.lane.b32.xlu0 %v687_v26, %s1375_s17  ;;  %v1050_v29 = vadd.f32 1.0, %v1367_v38 }
0x12c7   :  { %1368 = vrcp.f32 %v1049_v28 }
0x12c8   :  { %691 = vrot.lane.b32.xlu1 %v688_v27, %s1375_s17  ;;  %1370 = vrcp.f32 %v1050_v29 }
0x12ca   :  { %956 = vrot.lane.b32.xlu0 %v954_v55, %s1375_s17 }
0x12cc   :  { %958 = vrot.lane.b32.xlu1 %v955_v51, %s1375_s17 }
0x12ce   :  { %1271 = vrot.lane.b32.xlu0 %v1479_v54, %s1375_s17 }
0x12d0   :  { %1276 = vrot.lane.b32.xlu1 %v1275_v45, %s1375_s17 }
0x12d1   :  { %v1369_v54 = vpop.eup %1368 }
0x12d2   :  { %1281 = vrot.lane.b32.xlu0 %v1280_v57, %s1375_s17  ;;  %v1371_v30 = vpop.eup %1370  ;;  %v1063_v31 = vsub.f32 1.0, %v1369_v54  ;;  %v1061_v50 = vmul.f32 %v1369_v54, %v1633_v48  ;;  %v168_v48 = vld [vmem:[%s1815_s2 + $0x4] sm:$0x1] }
0x12d3   :  { %v1064_v37 = vsub.f32 1.0, %v1371_v30  ;;  %v1062_v39 = vmul.f32 %v1371_v30, %v1636_v36 }
0x132c   :  { %v1068_v49 = vpop.permute.xlu0 %1067 }
0x132d   :  { %v1073_v45 = vmul.f32 %v1068_v49, %v1063_v31 }
0x132e   :  { %v1070_v56 = vpop.permute.xlu1 %1069 }
0x132f   :  { %v1075_v35 = vadd.f32 %v1073_v45, %v1061_v50  ;;  %v1074_v33 = vmul.f32 %v1070_v56, %v1064_v37 }
0x1330   :  { %v157_v42 = vpop.permute.xlu0 %156 }
0x1331   :  { %v1176_v52 = vpack.c.bf16 %v1075_v35, %v1075_v35  ;;  %v1076_v53 = vadd.f32 %v1074_v33, %v1062_v39  ;;  %v166_v41 = vsel %vm1681_vm9, %v157_v42, %v165_v34 }
0x1332   :  { %167 = vst [vmem:[%s1815_s2] sm:$0x1] %v166_v41  ;;  %v159_v47 = vpop.permute.xlu1 %158 }
0x1333   :  { %v1086_v59 = vshll.u32 %v1176_v52, 16  ;;  %v1177_v32 = vpack.c.bf16 %v1076_v53, %v1076_v53  ;;  %v1109_v60 = vrot.slane %v1076_v53, 7  ;;  %v169_v61 = vsel %vm1681_vm9, %v159_v47, %v168_v48  ;;  %vm566_vm9 = vmand %vm428_vm10, %vm565_vm2 }
0x1334   :  { %170 = vst [vmem:[%s1815_s2 + $0x4] sm:$0x1] %v169_v61  ;;  %v423_v40 = vpop.permute.xlu0 %422  ;;  %vm1099_vm10 = vsmask.f32 7950 }
0x1335   :  { %v1090_v1 = vshll.u32 %v1177_v32, 16  ;;  %v432_v63 = vsel %vm1698_vm12, %v423_v40, %v431_v58  ;;  %v1110_v3 = vsel %vm174_vm6, %v1109_v60, %v1075_v35  ;;  %v1088_v6 = vrot.slane %v1086_v59, 5  ;;  %vm1100_vm11 = vmand %vm962_vm1, %vm1099_vm10 }
0x1336   :  { %433 = vst [vmem:[%s1815_s2] sm:$0x2] %v432_v63  ;;  %v425_v4 = vpop.permute.xlu1 %424  ;;  %1111 = vrot.lane.b32.xlu0 %v1110_v3, %s1375_s17  ;;  %vm963_vm6 = vsmask.f32 3328 }
0x1337   :  { %v1092_v2 = vrot.slane %v1090_v1, 5  ;;  %v435_v7 = vsel %vm1698_vm12, %v425_v4, %v434_v62  ;;  %vm964_vm4 = vmand %vm962_vm1, %vm963_vm6 }
0x1338   :  { %436 = vst [vmem:[%s1815_s2 + $0x4] sm:$0x2] %v435_v7  ;;  %v690_v8 = vpop.permute.xlu0 %689 }
0x1339   :  { %v699_v10 = vsel %vm1721_vm15, %v690_v8, %v698_v0  ;;  %v1285_v11 = vpack.i.bf16 %v1092_v2, %v1088_v6  ;;  %v300_v23 = vld [vmem:[%s1815_s2] sm:$0x1] }
0x133a   :  { %700 = vst [vmem:[%s1815_s2] sm:$0x4] %v699_v10  ;;  %v692_v12 = vpop.permute.xlu1 %691 }
0x133b   :  { %v702_v14 = vsel %vm1721_vm15, %v692_v12, %v701_v9  ;;  %1286 = vrot.lane.b32.xlu1 %v1285_v11, %s1375_s17  ;;  %v303_v24 = vld [vmem:[%s1815_s2 + $0x4] sm:$0x1] }
0x133c   :  { %703 = vst [vmem:[%s1815_s2 + $0x4] sm:$0x4] %v702_v14  ;;  %v957_v15 = vpop.permute.xlu0 %956 }
0x133d   :  { %v966_v17 = vsel %vm964_vm4, %v957_v15, %v965_v13  ;;  %v567_v43 = vld [vmem:[%s1815_s2] sm:$0x2] }
0x133e   :  { %967 = vst [vmem:[%s1815_s2] sm:$0x8] %v966_v17  ;;  %v959_v18 = vpop.permute.xlu1 %958 }
0x133f   :  { %v969_v19 = vsel %vm964_vm4, %v959_v18, %v968_v16  ;;  %v570_v44 = vld [vmem:[%s1815_s2 + $0x4] sm:$0x2] }
0x1340   :  { %970 = vst [vmem:[%s1815_s2 + $0x4] sm:$0x8] %v969_v19  ;;  %v1272_v20 = vpop.permute.xlu0 %1271 }
0x1341   :  { %v1274_v21 = vunpack.i.h.bf16 %v1272_v20  ;;  %v1273_v22 = vunpack.i.l.bf16 %v1272_v20  ;;  %v834_v30 = vld [vmem:[%s1815_s2] sm:$0x4] }
0x1342   :  { %v1277_v25 = vpop.permute.xlu1 %1276 }
0x1343   :  { %v301_v26 = vsel %vm299_vm3, %v1273_v22, %v300_v23  ;;  %v304_v27 = vsel %vm299_vm3, %v1274_v21, %v303_v24  ;;  %v1279_v55 = vunpack.i.h.bf16 %v1277_v25  ;;  %v1278_v51 = vunpack.i.l.bf16 %v1277_v25  ;;  %v837_v31 = vld [vmem:[%s1815_s2 + $0x4] sm:$0x4] }
0x1344   :  { %302 = vst [vmem:[%s1815_s2] sm:$0x1] %v301_v26  ;;  %305 = vst [vmem:[%s1815_s2 + $0x4] sm:$0x1] %v304_v27  ;;  %v1282_v46 = vpop.permute.xlu0 %1281 }
0x1345   :  { %v571_v38 = vsel %vm566_vm9, %v1279_v55, %v570_v44  ;;  %v568_v28 = vsel %vm566_vm9, %v1278_v51, %v567_v43  ;;  %v1284_v29 = vunpack.i.h.bf16 %v1282_v46  ;;  %v1283_v54 = vunpack.i.l.bf16 %v1282_v46  ;;  %v1101_v34 = vld [vmem:[%s1815_s2] sm:$0x8] }
0x1346   :  { %572 = vst [vmem:[%s1815_s2 + $0x4] sm:$0x2] %v571_v38  ;;  %569 = vst [vmem:[%s1815_s2] sm:$0x2] %v568_v28 }
0x1347   :  { %v835_v49 = vsel %vm833_vm7, %v1283_v54, %v834_v30  ;;  %v838_v50 = vsel %vm833_vm7, %v1284_v29, %v837_v31  ;;  %v1104_v35 = vld [vmem:[%s1815_s2 + $0x4] sm:$0x8] }
0x1348   :  { %836 = vst [vmem:[%s1815_s2] sm:$0x4] %v835_v49  ;;  %839 = vst [vmem:[%s1815_s2 + $0x4] sm:$0x4] %v838_v50 }
0x13a8   :  { %v1112_v45 = vpop.permute.xlu0 %1111 }
0x13a9   :  { %1115 = vst.msk [vmem:[#allocation2] sm:$0x3] %vm16_vm0, %v1112_v45 }
0x13ad   :  { %v1287_v37 = vpop.permute.xlu1 %1286 }
0x13ae   :  { %v1289_v56 = vunpack.i.h.bf16 %v1287_v37  ;;  %v1288_v57 = vunpack.i.l.bf16 %v1287_v37 }
0x13b0   :  { %v1105_v39 = vsel %vm1100_vm11, %v1289_v56, %v1104_v35  ;;  %v1102_v33 = vsel %vm1100_vm11, %v1288_v57, %v1101_v34 }
0x13b1   :  { %1106 = vst [vmem:[%s1815_s2 + $0x4] sm:$0x8] %v1105_v39  ;;  %1103 = vst [vmem:[%s1815_s2] sm:$0x8] %v1102_v33 }

</bundles_post_ra>
